<compile_context>
chip_gen: v7x
topology: tpu7x:2x2x1
jax: 0.10.0
libtpu: 0.0.40
codegen_flags: <defaults>
</compile_context>

<pallas_src>
import jax
import jax.numpy as jnp
from jax.experimental import pallas as pl
from jax.experimental.pallas import tpu as pltpu

HIDDEN = 32
OUTPUT = 64
MAX_LENGTH = 50
LANE = 128
NEG = -1e30  # finite "minus infinity" folded into padded bias columns

# Row layout of the packed weight slab (lane width = 128).
ROW_ATTN_E = 0                   # (H,128): attn.weight.T rows for the embedding half
ROW_ATTN_H = ROW_ATTN_E + HIDDEN  # (H,128): attn.weight.T rows for the hidden half
ROW_GRU_X = ROW_ATTN_H + HIDDEN   # (H,128): [W_ir.T W_iz.T W_in.T 0]
ROW_GRU_H = ROW_GRU_X + HIDDEN    # (H,128): [W_hr.T W_hz.T 0 W_hn.T]
ROW_COMB_E = ROW_GRU_H + HIDDEN   # (H,128): attn_combine.weight.T rows (embedding half)
ROW_COMB_A = ROW_COMB_E + HIDDEN  # (H,128): attn_combine.weight.T rows (attn_applied half)
ROW_OUT = ROW_COMB_A + HIDDEN     # (H,128): out.weight.T
ROW_BIAS = ROW_OUT + HIDDEN       # (8,128): rows = [attn_b*, gru_b, comb_b, out_b*, 0...]
SLAB_ROWS = ROW_BIAS + 8          # 232   (* padded cols pre-filled with -1e30)


def fused_decoder_kernel(emb_ref,    # VMEM (T, H)      pre-gathered embeddings
                         h0_ref,     # VMEM (1, H)      initial hidden
                         enc_ref,    # VMEM (128, H)    encoder outputs, zero-padded rows >= ML
                         slab_ref,   # VMEM (232, 128)  packed weights/biases
                         logp_ref,   # VMEM (T, 128)    out: log-softmax logits (cols [0,O))
                         attn_ref,   # VMEM (T, 128)    out: attention weights (cols [0,ML))
                         hid_ref,    # VMEM (T, H)      out: per-step new hidden
                         attn_pre,   # VMEM scratch (T, 128) precomputed E@W_attn_top + b_attn
                         comb_pre):  # VMEM scratch (T, 128) precomputed E@W_comb_top + b_comb
    H = HIDDEN
    T = emb_ref.shape[0]

    biases = slab_ref[ROW_BIAS:ROW_BIAS + 8, :]
    b_attn = biases[0:1, :]   # padded cols (>= ML) are -1e30 (mask folded in)
    b_gru = biases[1:2, :]
    b_comb = biases[2:3, :]
    b_out = biases[3:4, :]    # padded cols (>= O) are -1e30 (mask folded in)

    emb = emb_ref[...]        # (T, H)  dropout = identity (eval mode)

    # ---- prologue: hoist token-dependent contributions out of the recurrence ----
    attn_pre[...] = (jnp.dot(emb, slab_ref[ROW_ATTN_E:ROW_ATTN_H, :],
                             preferred_element_type=jnp.float32) + b_attn)   # (T,128)
    comb_pre[...] = (jnp.dot(emb, slab_ref[ROW_COMB_E:ROW_COMB_A, :],
                             preferred_element_type=jnp.float32) + b_comb)   # (T,128)

    # Loop-resident small weight tiles (hoisted once, stay in vregs / VMEM).
    w_attn_h = slab_ref[ROW_ATTN_H:ROW_GRU_X, :]   # (H,128)
    w_gru_x = slab_ref[ROW_GRU_X:ROW_GRU_H, :]     # (H,128)
    w_gru_h = slab_ref[ROW_GRU_H:ROW_COMB_E, :]    # (H,128)
    w_comb_a = slab_ref[ROW_COMB_A:ROW_OUT, :]     # (H,128)

    def step(t, h):
        # --- attention: softmax over the first ML lanes (padded lanes have bias -1e30) ---
        a_logits = (jnp.dot(h, w_attn_h, preferred_element_type=jnp.float32)
                    + attn_pre[pl.ds(t, 1), :])                    # (1,128)
        m = jnp.max(a_logits, axis=1, keepdims=True)
        e = jnp.exp(a_logits - m)                                  # padded lanes -> exactly 0
        s = jnp.sum(e, axis=1, keepdims=True)
        r0 = pl.reciprocal(s, approx=True)
        inv_s = r0 * (2.0 - s * r0)                                # one Newton step (~1e-6 rel)
        attn_w = e * inv_s                                         # (1,128)
        attn_ref[pl.ds(t, 1), :] = attn_w

        attn_applied = jnp.dot(attn_w, enc_ref[...],
                               preferred_element_type=jnp.float32)  # (1, H)

        # --- attn_combine + relu (embedding contribution precomputed) ---
        comb = (jnp.dot(attn_applied, w_comb_a, preferred_element_type=jnp.float32)
                + comb_pre[pl.ds(t, 1), :])
        x = jnp.maximum(comb[:, 0:H], 0.0)                         # (1, H)

        # --- GRU cell (PyTorch gate order), split x/h matmuls: cols [r | z | gi_n | gh_n] ---
        g = (jnp.dot(x, w_gru_x, preferred_element_type=jnp.float32)
             + jnp.dot(h, w_gru_h, preferred_element_type=jnp.float32)
             + b_gru)                                              # (1, 4H)
        r = jax.nn.sigmoid(g[:, 0:H])
        z = jax.nn.sigmoid(g[:, H:2 * H])
        n = jnp.tanh(g[:, 2 * H:3 * H] + r * g[:, 3 * H:4 * H])
        h_new = (1.0 - z) * n + z * h                              # (1, H)
        hid_ref[pl.ds(t, 1), :] = h_new
        return h_new

    jax.lax.fori_loop(0, T, step, h0_ref[...], unroll=min(T, 8))

    # ---- epilogue: batched out projection + log_softmax for all steps at once ----
    h_all = hid_ref[...]                                           # (T, H)
    logits = (jnp.dot(h_all, slab_ref[ROW_OUT:ROW_BIAS, :],
                      preferred_element_type=jnp.float32) + b_out)  # (T,128), pad cols -1e30
    lm = jnp.max(logits, axis=1, keepdims=True)
    sh = logits - lm
    logp_ref[...] = sh - jnp.log(jnp.sum(jnp.exp(sh), axis=1, keepdims=True))


# ----------------------------------------------------------------------------- params

def init_params(key, hidden_size=HIDDEN, output_size=OUTPUT, max_length=MAX_LENGTH):
    """PyTorch-layout parameters ((out_features, in_features) etc.)."""
    ks = jax.random.split(key, 10)

    def u(k, shape, fan_in):
        b = 1.0 / jnp.sqrt(jnp.float32(fan_in))
        return jax.random.uniform(k, shape, jnp.float32, -b, b)

    H, O, ML = hidden_size, output_size, max_length
    return {
        "emb":    jax.random.normal(ks[0], (O, H), jnp.float32),
        "attn_w": u(ks[1], (ML, 2 * H), 2 * H),
        "attn_b": u(ks[2], (ML,), 2 * H),
        "comb_w": u(ks[3], (H, 2 * H), 2 * H),
        "comb_b": u(ks[4], (H,), 2 * H),
        "w_ih":   u(ks[5], (3 * H, H), H),
        "b_ih":   u(ks[6], (3 * H,), H),
        "w_hh":   u(ks[7], (3 * H, H), H),
        "b_hh":   u(ks[8], (3 * H,), H),
        "out_w":  u(ks[9], (O, H), H),
        "out_b":  jnp.zeros((O,), jnp.float32),
    }


def pack_params(p):
    """One-time repack of PyTorch-layout params into kernel layout (no per-call work)."""
    H, O, ML = HIDDEN, OUTPUT, MAX_LENGTH
    assert 4 * H == LANE and ML <= LANE and O <= LANE and 2 * H <= LANE
    f32 = jnp.float32

    def pad_cols(w):
        return jnp.pad(w.astype(f32), ((0, 0), (0, LANE - w.shape[1])))

    # attention Linear(2H -> ML): split into embedding / hidden halves.
    attn_wT = p["attn_w"].astype(f32).T                    # (2H, ML)
    w_attn_e = pad_cols(attn_wT[0:H])                      # (H, 128)
    w_attn_h = pad_cols(attn_wT[H:2 * H])                  # (H, 128)
    b_attn = jnp.concatenate(
        [p["attn_b"].astype(f32), jnp.full((LANE - ML,), NEG, f32)]).reshape(1, LANE)

    # GRU: split x-half / h-half, gate column layout [r | z | gi_n | gh_n].
    w_ih, w_hh = p["w_ih"].astype(f32), p["w_hh"].astype(f32)
    W_ir, W_iz, W_in = w_ih[0:H], w_ih[H:2 * H], w_ih[2 * H:3 * H]
    W_hr, W_hz, W_hn = w_hh[0:H], w_hh[H:2 * H], w_hh[2 * H:3 * H]
    zero = jnp.zeros((H, H), f32)
    w_gru_x = jnp.concatenate([W_ir.T, W_iz.T, W_in.T, zero], axis=1)   # (H, 128)
    w_gru_h = jnp.concatenate([W_hr.T, W_hz.T, zero, W_hn.T], axis=1)   # (H, 128)
    b_ih, b_hh = p["b_ih"].astype(f32), p["b_hh"].astype(f32)
    b_gru = jnp.concatenate([
        b_ih[0:H] + b_hh[0:H], b_ih[H:2 * H] + b_hh[H:2 * H],
        b_ih[2 * H:3 * H], b_hh[2 * H:3 * H]]).reshape(1, LANE)

    # attn_combine Linear(2H -> H): split into embedding / attn_applied halves.
    comb_wT = p["comb_w"].astype(f32).T                    # (2H, H)
    w_comb_e = pad_cols(comb_wT[0:H])                      # (H, 128)
    w_comb_a = pad_cols(comb_wT[H:2 * H])                  # (H, 128)
    b_comb = pad_cols(p["comb_b"].reshape(1, H))

    # output Linear(H -> O), padded bias cols -1e30 (log_softmax lane mask folded in).
    w_out = pad_cols(p["out_w"].astype(f32).T)             # (H, 128)
    b_out = jnp.concatenate(
        [p["out_b"].astype(f32), jnp.full((LANE - O,), NEG, f32)]).reshape(1, LANE)

    bias_block = jnp.concatenate(
        [b_attn, b_gru, b_comb, b_out, jnp.zeros((4, LANE), f32)], axis=0)   # (8, 128)
    slab = jnp.concatenate(
        [w_attn_e, w_attn_h, w_gru_x, w_gru_h, w_comb_e, w_comb_a, w_out, bias_block], axis=0)
    assert slab.shape == (SLAB_ROWS, LANE)

    return {"slab": slab, "emb": p["emb"].astype(f32)}     # emb table gathered by XLA per call


# ----------------------------------------------------------------------------- wrappers

def attn_decoder_decode(tokens, hidden, encoder_outputs, packed):
    """Run T chained decoder steps in a single pallas_call (single grid step).

    tokens: (T,) int32; hidden: (1,1,H); encoder_outputs: (ML, H)
    returns logp (T, O), hiddens (T, H), attn_weights (T, ML)
    """
    H, O, ML = HIDDEN, OUTPUT, MAX_LENGTH
    T = tokens.shape[0]
    tok = tokens.reshape(T).astype(jnp.int32)
    emb_seq = packed["emb"][tok]                                         # (T, H) XLA gather
    h0 = hidden.reshape(1, H).astype(jnp.float32)
    enc = jnp.pad(encoder_outputs.astype(jnp.float32),
                  ((0, LANE - ML), (0, 0)))                              # (128, H)

    grid_spec = pltpu.PrefetchScalarGridSpec(
        num_scalar_prefetch=0,
        grid=(1,),
        in_specs=[
            pl.BlockSpec((T, H), lambda i: (0, 0)),              # pre-gathered embeddings
            pl.BlockSpec((1, H), lambda i: (0, 0)),              # initial hidden
            pl.BlockSpec((LANE, H), lambda i: (0, 0)),           # padded encoder outputs
            pl.BlockSpec((SLAB_ROWS, LANE), lambda i: (0, 0)),   # packed weights (resident)
        ],
        out_specs=[
            pl.BlockSpec((T, LANE), lambda i: (0, 0)),           # logp (lane-dense)
            pl.BlockSpec((T, LANE), lambda i: (0, 0)),           # attn weights (lane-dense)
            pl.BlockSpec((T, H), lambda i: (0, 0)),              # hiddens
        ],
        scratch_shapes=[
            pltpu.VMEM((T, LANE), jnp.float32),                  # attn_pre
            pltpu.VMEM((T, LANE), jnp.float32),                  # comb_pre
        ],
    )

    logp, attn_w, hiddens = pl.pallas_call(
        fused_decoder_kernel,
        grid_spec=grid_spec,
        out_shape=(
            jax.ShapeDtypeStruct((T, LANE), jnp.float32),
            jax.ShapeDtypeStruct((T, LANE), jnp.float32),
            jax.ShapeDtypeStruct((T, H), jnp.float32),
        ),
        compiler_params=pltpu.CompilerParams(
            dimension_semantics=("arbitrary",),
        ),
    )(emb_seq, h0, enc, packed["slab"])

    return logp[:, :O], hiddens, attn_w[:, :ML]


def attn_decoder_forward(token, hidden, encoder_outputs, packed):
    """Single-step interface matching the PyTorch forward: (logp, hidden, attn_weights)."""
    logp, hiddens, attn_w = attn_decoder_decode(
        token.reshape(1), hidden, encoder_outputs, packed)
    return logp, hiddens.reshape(1, 1, HIDDEN), attn_w


# ----------------------------------------------------------------------------- reference

def ref_forward(token, hidden, enc, p):
    """Pure-JAX reference mirroring the PyTorch forward (eval mode)."""
    H = HIDDEN
    embedded = p["emb"][token.reshape(())].reshape(1, H)
    h = hidden.reshape(1, H)
    cat1 = jnp.concatenate([embedded, h], axis=1)
    attn_w = jax.nn.softmax(cat1 @ p["attn_w"].T + p["attn_b"], axis=1)
    attn_applied = attn_w @ enc
    cat2 = jnp.concatenate([embedded, attn_applied], axis=1)
    x = jax.nn.relu(cat2 @ p["comb_w"].T + p["comb_b"])
    gi = x @ p["w_ih"].T + p["b_ih"]
    gh = h @ p["w_hh"].T + p["b_hh"]
    r = jax.nn.sigmoid(gi[:, :H] + gh[:, :H])
    z = jax.nn.sigmoid(gi[:, H:2 * H] + gh[:, H:2 * H])
    n = jnp.tanh(gi[:, 2 * H:] + r * gh[:, 2 * H:])
    hn = (1.0 - z) * n + z * h
    logp = jax.nn.log_softmax(hn @ p["out_w"].T + p["out_b"], axis=1)
    return logp, hn.reshape(1, 1, H), attn_w


def ref_decode(tokens, hidden, enc, p):
    logps, hiddens, attns = [], [], []
    h = hidden
    for t in range(tokens.shape[0]):
        logp, h, aw = ref_forward(tokens[t].reshape(1, 1), h, enc, p)
        logps.append(logp)
        hiddens.append(h.reshape(1, HIDDEN))
        attns.append(aw)
    return (jnp.concatenate(logps, 0),
            jnp.concatenate(hiddens, 0),
            jnp.concatenate(attns, 0))


if __name__ == "__main__":
    key = jax.random.PRNGKey(0)
    k_p, k_tok, k_h, k_enc = jax.random.split(key, 4)

    params = init_params(k_p)
    packed = pack_params(params)          # one-time repack into kernel layout

    T = 8
    tokens = jax.random.randint(k_tok, (T,), 0, OUTPUT, dtype=jnp.int32)
    hidden0 = jax.random.normal(k_h, (1, 1, HIDDEN), jnp.float32)
    encoder_outputs = jax.random.normal(k_enc, (MAX_LENGTH, HIDDEN), jnp.float32)

    # Fused T-step decode in a single kernel launch (single grid step).
    decode = jax.jit(attn_decoder_decode)
    logp, hiddens, attn_w = decode(tokens, hidden0, encoder_outputs, packed)
    jax.block_until_ready((logp, hiddens, attn_w))

    r_logp, r_hid, r_attn = ref_decode(tokens, hidden0, encoder_outputs, params)
    assert jnp.allclose(logp, r_logp, atol=1e-4, rtol=1e-4)
    assert jnp.allclose(hiddens, r_hid, atol=1e-4, rtol=1e-4)
    assert jnp.allclose(attn_w, r_attn, atol=1e-4, rtol=1e-4)

    # Single-step interface (original module signature).
    logp1, h1, aw1 = attn_decoder_forward(
        tokens[0].reshape(1, 1), hidden0, encoder_outputs, packed)
    jax.block_until_ready((logp1, h1, aw1))
    r1_logp, r1_h, r1_aw = ref_forward(
        tokens[0].reshape(1, 1), hidden0, encoder_outputs, params)
    assert jnp.allclose(logp1, r1_logp, atol=1e-4, rtol=1e-4)
    assert jnp.allclose(h1, r1_h, atol=1e-4, rtol=1e-4)
    assert jnp.allclose(aw1, r1_aw, atol=1e-4, rtol=1e-4)

    print("KERNEL_OK")
</pallas_src>

<mosaic_0001>
module attributes {stable_mosaic.version = 11 : i64} {
  func.func @fused_decoder_kernel(%arg0: i32, %arg1: memref<8x32xf32, #tpu.memory_space<vmem>>, %arg2: memref<1x32xf32, #tpu.memory_space<vmem>>, %arg3: memref<128x32xf32, #tpu.memory_space<vmem>>, %arg4: memref<232x128xf32, #tpu.memory_space<vmem>>, %arg5: memref<8x128xf32, #tpu.memory_space<vmem>>, %arg6: memref<8x128xf32, #tpu.memory_space<vmem>>, %arg7: memref<8x32xf32, #tpu.memory_space<vmem>>, %arg8: memref<8x128xf32, #tpu.memory_space<vmem>>, %arg9: memref<8x128xf32, #tpu.memory_space<vmem>>) attributes {dimension_semantics = [#tpu.dimension_semantics<arbitrary>], iteration_bounds = array<i64: 1>, scalar_prefetch = 0 : i64, scratch_operands = 2 : i64, tpu.core_type = #tpu.core_type<tc>, window_params = [{pipeline_mode = #tpu.pipeline_mode<synchronous>, transform_indices = @transform_0, window_bounds = array<i64: 8, 32>}, {pipeline_mode = #tpu.pipeline_mode<synchronous>, transform_indices = @transform_1, window_bounds = array<i64: 1, 32>}, {pipeline_mode = #tpu.pipeline_mode<synchronous>, transform_indices = @transform_2, window_bounds = array<i64: 128, 32>}, {pipeline_mode = #tpu.pipeline_mode<synchronous>, transform_indices = @transform_3, window_bounds = array<i64: 232, 128>}, {pipeline_mode = #tpu.pipeline_mode<synchronous>, transform_indices = @transform_4, window_bounds = array<i64: 8, 128>}, {pipeline_mode = #tpu.pipeline_mode<synchronous>, transform_indices = @transform_5, window_bounds = array<i64: 8, 128>}, {pipeline_mode = #tpu.pipeline_mode<synchronous>, transform_indices = @transform_6, window_bounds = array<i64: 8, 32>}]} {
    %c224 = arith.constant 224 : index
    %c0 = arith.constant 0 : index
    %0 = vector.load %arg4[%c224, %c0] : memref<232x128xf32, #tpu.memory_space<vmem>>, vector<8x128xf32>
    %1 = vector.extract_strided_slice %0 {offsets = [0, 0], sizes = [1, 128], strides = [1, 1]} : vector<8x128xf32> to vector<1x128xf32>
    %2 = vector.extract_strided_slice %0 {offsets = [1, 0], sizes = [1, 128], strides = [1, 1]} : vector<8x128xf32> to vector<1x128xf32>
    %3 = vector.extract_strided_slice %0 {offsets = [2, 0], sizes = [1, 128], strides = [1, 1]} : vector<8x128xf32> to vector<1x128xf32>
    %4 = vector.extract_strided_slice %0 {offsets = [3, 0], sizes = [1, 128], strides = [1, 1]} : vector<8x128xf32> to vector<1x128xf32>
    %c0_0 = arith.constant 0 : index
    %c0_1 = arith.constant 0 : index
    %5 = vector.load %arg1[%c0_0, %c0_1] : memref<8x32xf32, #tpu.memory_space<vmem>>, vector<8x32xf32>
    %c0_2 = arith.constant 0 : index
    %c0_3 = arith.constant 0 : index
    %6 = vector.load %arg4[%c0_2, %c0_3] : memref<232x128xf32, #tpu.memory_space<vmem>>, vector<32x128xf32>
    %cst = arith.constant dense<0.000000e+00> : vector<8x128xf32>
    %7 = tpu.matmul %5, %6, %cst {dimension_numbers = #tpu.dot_dimension_numbers<[1], [0], [0], [1], [0, 0, 1, 1], [], []>} : vector<8x32xf32>, vector<32x128xf32>, vector<8x128xf32> -> vector<8x128xf32>
    %8 = vector.broadcast %1 : vector<1x128xf32> to vector<8x128xf32>
    %9 = arith.addf %7, %8 : vector<8x128xf32>
    %c0_4 = arith.constant 0 : index
    %c0_5 = arith.constant 0 : index
    %10 = vector.load %arg8[%c0_4, %c0_5] : memref<8x128xf32, #tpu.memory_space<vmem>>, vector<8x128xf32>
    tpu.vector_store %arg8[%c0_4, %c0_5], %9 {strides = array<i32>} : memref<8x128xf32, #tpu.memory_space<vmem>>, vector<8x128xf32>,
    %c128 = arith.constant 128 : index
    %c0_6 = arith.constant 0 : index
    %11 = vector.load %arg4[%c128, %c0_6] : memref<232x128xf32, #tpu.memory_space<vmem>>, vector<32x128xf32>
    %cst_7 = arith.constant dense<0.000000e+00> : vector<8x128xf32>
    %12 = tpu.matmul %5, %11, %cst_7 {dimension_numbers = #tpu.dot_dimension_numbers<[1], [0], [0], [1], [0, 0, 1, 1], [], []>} : vector<8x32xf32>, vector<32x128xf32>, vector<8x128xf32> -> vector<8x128xf32>
    %13 = vector.broadcast %3 : vector<1x128xf32> to vector<8x128xf32>
    %14 = arith.addf %12, %13 : vector<8x128xf32>
    %c0_8 = arith.constant 0 : index
    %c0_9 = arith.constant 0 : index
    %15 = vector.load %arg9[%c0_8, %c0_9] : memref<8x128xf32, #tpu.memory_space<vmem>>, vector<8x128xf32>
    tpu.vector_store %arg9[%c0_8, %c0_9], %14 {strides = array<i32>} : memref<8x128xf32, #tpu.memory_space<vmem>>, vector<8x128xf32>,
    %c32 = arith.constant 32 : index
    %c0_10 = arith.constant 0 : index
    %16 = vector.load %arg4[%c32, %c0_10] : memref<232x128xf32, #tpu.memory_space<vmem>>, vector<32x128xf32>
    %c64 = arith.constant 64 : index
    %c0_11 = arith.constant 0 : index
    %17 = vector.load %arg4[%c64, %c0_11] : memref<232x128xf32, #tpu.memory_space<vmem>>, vector<32x128xf32>
    %c96 = arith.constant 96 : index
    %c0_12 = arith.constant 0 : index
    %18 = vector.load %arg4[%c96, %c0_12] : memref<232x128xf32, #tpu.memory_space<vmem>>, vector<32x128xf32>
    %c160 = arith.constant 160 : index
    %c0_13 = arith.constant 0 : index
    %19 = vector.load %arg4[%c160, %c0_13] : memref<232x128xf32, #tpu.memory_space<vmem>>, vector<32x128xf32>
    %c0_14 = arith.constant 0 : index
    %c0_15 = arith.constant 0 : index
    %20 = vector.load %arg2[%c0_14, %c0_15] : memref<1x32xf32, #tpu.memory_space<vmem>>, vector<1x32xf32>
    %c0_i32 = arith.constant 0 : i32
    %cst_16 = arith.constant dense<0.000000e+00> : vector<1x128xf32>
    %21 = tpu.matmul %20, %16, %cst_16 {dimension_numbers = #tpu.dot_dimension_numbers<[1], [0], [0], [1], [0, 0, 1, 1], [], []>} : vector<1x32xf32>, vector<32x128xf32>, vector<1x128xf32> -> vector<1x128xf32>
    %22 = arith.index_cast %c0_i32 : i32 to index
    %c0_17 = arith.constant 0 : index
    %23 = vector.load %arg8[%22, %c0_17] : memref<8x128xf32, #tpu.memory_space<vmem>>, vector<1x128xf32>
    %24 = arith.addf %21, %23 : vector<1x128xf32>
    %cst_18 = arith.constant dense<0xFF800000> : vector<1xf32>
    %25 = vector.multi_reduction <maximumf>, %24, %cst_18 [1] : vector<1x128xf32> to vector<1xf32>
    %26 = vector.shape_cast %25 : vector<1xf32> to vector<1x1xf32>
    %27 = vector.broadcast %26 : vector<1x1xf32> to vector<1x128xf32>
    %28 = arith.subf %24, %27 : vector<1x128xf32>
    %29 = math.exp %28 : vector<1x128xf32>
    %cst_19 = arith.constant dense<0.000000e+00> : vector<1xf32>
    %30 = vector.multi_reduction <add>, %29, %cst_19 [1] : vector<1x128xf32> to vector<1xf32>
    %31 = vector.shape_cast %30 : vector<1xf32> to vector<1x1xf32>
    %32 = tpu.reciprocal %31 {approx = true} : vector<1x1xf32> -> vector<1x1xf32>
    %33 = arith.mulf %31, %32 : vector<1x1xf32>
    %cst_20 = arith.constant 2.000000e+00 : f32
    %34 = vector.broadcast %cst_20 : f32 to vector<1x1xf32>
    %35 = arith.subf %34, %33 : vector<1x1xf32>
    %36 = arith.mulf %32, %35 : vector<1x1xf32>
    %37 = vector.broadcast %36 : vector<1x1xf32> to vector<1x128xf32>
    %38 = arith.mulf %29, %37 : vector<1x128xf32>
    %39 = arith.index_cast %c0_i32 : i32 to index
    %c0_21 = arith.constant 0 : index
    %40 = vector.load %arg6[%39, %c0_21] : memref<8x128xf32, #tpu.memory_space<vmem>>, vector<1x128xf32>
    tpu.vector_store %arg6[%39, %c0_21], %38 {strides = array<i32>} : memref<8x128xf32, #tpu.memory_space<vmem>>, vector<1x128xf32>,
    %c0_22 = arith.constant 0 : index
    %c0_23 = arith.constant 0 : index
    %41 = vector.load %arg3[%c0_22, %c0_23] : memref<128x32xf32, #tpu.memory_space<vmem>>, vector<128x32xf32>
    %cst_24 = arith.constant dense<0.000000e+00> : vector<1x32xf32>
    %42 = tpu.matmul %38, %41, %cst_24 {dimension_numbers = #tpu.dot_dimension_numbers<[1], [0], [0], [1], [0, 0, 1, 1], [], []>} : vector<1x128xf32>, vector<128x32xf32>, vector<1x32xf32> -> vector<1x32xf32>
    %cst_25 = arith.constant dense<0.000000e+00> : vector<1x128xf32>
    %43 = tpu.matmul %42, %19, %cst_25 {dimension_numbers = #tpu.dot_dimension_numbers<[1], [0], [0], [1], [0, 0, 1, 1], [], []>} : vector<1x32xf32>, vector<32x128xf32>, vector<1x128xf32> -> vector<1x128xf32>
    %44 = arith.index_cast %c0_i32 : i32 to index
    %c0_26 = arith.constant 0 : index
    %45 = vector.load %arg9[%44, %c0_26] : memref<8x128xf32, #tpu.memory_space<vmem>>, vector<1x128xf32>
    %46 = arith.addf %43, %45 : vector<1x128xf32>
    %47 = vector.extract_strided_slice %46 {offsets = [0, 0], sizes = [1, 32], strides = [1, 1]} : vector<1x128xf32> to vector<1x32xf32>
    %cst_27 = arith.constant 0.000000e+00 : f32
    %48 = vector.broadcast %cst_27 : f32 to vector<1x32xf32>
    %49 = arith.maximumf %47, %48 : vector<1x32xf32>
    %cst_28 = arith.constant dense<0.000000e+00> : vector<1x128xf32>
    %50 = tpu.matmul %49, %17, %cst_28 {dimension_numbers = #tpu.dot_dimension_numbers<[1], [0], [0], [1], [0, 0, 1, 1], [], []>} : vector<1x32xf32>, vector<32x128xf32>, vector<1x128xf32> -> vector<1x128xf32>
    %cst_29 = arith.constant dense<0.000000e+00> : vector<1x128xf32>
    %51 = tpu.matmul %20, %18, %cst_29 {dimension_numbers = #tpu.dot_dimension_numbers<[1], [0], [0], [1], [0, 0, 1, 1], [], []>} : vector<1x32xf32>, vector<32x128xf32>, vector<1x128xf32> -> vector<1x128xf32>
    %52 = arith.addf %50, %51 : vector<1x128xf32>
    %53 = arith.addf %52, %2 : vector<1x128xf32>
    %54 = vector.extract_strided_slice %53 {offsets = [0, 0], sizes = [1, 32], strides = [1, 1]} : vector<1x128xf32> to vector<1x32xf32>
    %55 = arith.negf %54 : vector<1x32xf32>
    %56 = math.exp %55 : vector<1x32xf32>
    %cst_30 = arith.constant 1.000000e+00 : f32
    %57 = vector.broadcast %cst_30 : f32 to vector<1x32xf32>
    %58 = arith.addf %57, %56 : vector<1x32xf32>
    %59 = arith.divf %57, %58 : vector<1x32xf32>
    %60 = vector.extract_strided_slice %53 {offsets = [0, 32], sizes = [1, 32], strides = [1, 1]} : vector<1x128xf32> to vector<1x32xf32>
    %61 = arith.negf %60 : vector<1x32xf32>
    %62 = math.exp %61 : vector<1x32xf32>
    %cst_31 = arith.constant 1.000000e+00 : f32
    %63 = vector.broadcast %cst_31 : f32 to vector<1x32xf32>
    %64 = arith.addf %63, %62 : vector<1x32xf32>
    %65 = arith.divf %63, %64 : vector<1x32xf32>
    %66 = vector.extract_strided_slice %53 {offsets = [0, 64], sizes = [1, 32], strides = [1, 1]} : vector<1x128xf32> to vector<1x32xf32>
    %67 = vector.extract_strided_slice %53 {offsets = [0, 96], sizes = [1, 32], strides = [1, 1]} : vector<1x128xf32> to vector<1x32xf32>
    %68 = arith.mulf %59, %67 : vector<1x32xf32>
    %69 = arith.addf %66, %68 : vector<1x32xf32>
    %70 = math.tanh %69 : vector<1x32xf32>
    %cst_32 = arith.constant 1.000000e+00 : f32
    %71 = vector.broadcast %cst_32 : f32 to vector<1x32xf32>
    %72 = arith.subf %71, %65 : vector<1x32xf32>
    %73 = arith.mulf %72, %70 : vector<1x32xf32>
    %74 = arith.mulf %65, %20 : vector<1x32xf32>
    %75 = arith.addf %73, %74 : vector<1x32xf32>
    %76 = arith.index_cast %c0_i32 : i32 to index
    %c0_33 = arith.constant 0 : index
    %77 = vector.load %arg7[%76, %c0_33] : memref<8x32xf32, #tpu.memory_space<vmem>>, vector<1x32xf32>
    tpu.vector_store %arg7[%76, %c0_33], %75 {strides = array<i32>} : memref<8x32xf32, #tpu.memory_space<vmem>>, vector<1x32xf32>,
    %c1_i32 = arith.constant 1 : i32
    %cst_34 = arith.constant dense<0.000000e+00> : vector<1x128xf32>
    %78 = tpu.matmul %75, %16, %cst_34 {dimension_numbers = #tpu.dot_dimension_numbers<[1], [0], [0], [1], [0, 0, 1, 1], [], []>} : vector<1x32xf32>, vector<32x128xf32>, vector<1x128xf32> -> vector<1x128xf32>
    %79 = arith.index_cast %c1_i32 : i32 to index
    %c0_35 = arith.constant 0 : index
    %80 = vector.load %arg8[%79, %c0_35] : memref<8x128xf32, #tpu.memory_space<vmem>>, vector<1x128xf32>
    %81 = arith.addf %78, %80 : vector<1x128xf32>
    %cst_36 = arith.constant dense<0xFF800000> : vector<1xf32>
    %82 = vector.multi_reduction <maximumf>, %81, %cst_36 [1] : vector<1x128xf32> to vector<1xf32>
    %83 = vector.shape_cast %82 : vector<1xf32> to vector<1x1xf32>
    %84 = vector.broadcast %83 : vector<1x1xf32> to vector<1x128xf32>
    %85 = arith.subf %81, %84 : vector<1x128xf32>
    %86 = math.exp %85 : vector<1x128xf32>
    %cst_37 = arith.constant dense<0.000000e+00> : vector<1xf32>
    %87 = vector.multi_reduction <add>, %86, %cst_37 [1] : vector<1x128xf32> to vector<1xf32>
    %88 = vector.shape_cast %87 : vector<1xf32> to vector<1x1xf32>
    %89 = tpu.reciprocal %88 {approx = true} : vector<1x1xf32> -> vector<1x1xf32>
    %90 = arith.mulf %88, %89 : vector<1x1xf32>
    %cst_38 = arith.constant 2.000000e+00 : f32
    %91 = vector.broadcast %cst_38 : f32 to vector<1x1xf32>
    %92 = arith.subf %91, %90 : vector<1x1xf32>
    %93 = arith.mulf %89, %92 : vector<1x1xf32>
    %94 = vector.broadcast %93 : vector<1x1xf32> to vector<1x128xf32>
    %95 = arith.mulf %86, %94 : vector<1x128xf32>
    %96 = arith.index_cast %c1_i32 : i32 to index
    %c0_39 = arith.constant 0 : index
    %97 = vector.load %arg6[%96, %c0_39] : memref<8x128xf32, #tpu.memory_space<vmem>>, vector<1x128xf32>
    tpu.vector_store %arg6[%96, %c0_39], %95 {strides = array<i32>} : memref<8x128xf32, #tpu.memory_space<vmem>>, vector<1x128xf32>,
    %c0_40 = arith.constant 0 : index
    %c0_41 = arith.constant 0 : index
    %98 = vector.load %arg3[%c0_40, %c0_41] : memref<128x32xf32, #tpu.memory_space<vmem>>, vector<128x32xf32>
    %cst_42 = arith.constant dense<0.000000e+00> : vector<1x32xf32>
    %99 = tpu.matmul %95, %98, %cst_42 {dimension_numbers = #tpu.dot_dimension_numbers<[1], [0], [0], [1], [0, 0, 1, 1], [], []>} : vector<1x128xf32>, vector<128x32xf32>, vector<1x32xf32> -> vector<1x32xf32>
    %cst_43 = arith.constant dense<0.000000e+00> : vector<1x128xf32>
    %100 = tpu.matmul %99, %19, %cst_43 {dimension_numbers = #tpu.dot_dimension_numbers<[1], [0], [0], [1], [0, 0, 1, 1], [], []>} : vector<1x32xf32>, vector<32x128xf32>, vector<1x128xf32> -> vector<1x128xf32>
    %101 = arith.index_cast %c1_i32 : i32 to index
    %c0_44 = arith.constant 0 : index
    %102 = vector.load %arg9[%101, %c0_44] : memref<8x128xf32, #tpu.memory_space<vmem>>, vector<1x128xf32>
    %103 = arith.addf %100, %102 : vector<1x128xf32>
    %104 = vector.extract_strided_slice %103 {offsets = [0, 0], sizes = [1, 32], strides = [1, 1]} : vector<1x128xf32> to vector<1x32xf32>
    %cst_45 = arith.constant 0.000000e+00 : f32
    %105 = vector.broadcast %cst_45 : f32 to vector<1x32xf32>
    %106 = arith.maximumf %104, %105 : vector<1x32xf32>
    %cst_46 = arith.constant dense<0.000000e+00> : vector<1x128xf32>
    %107 = tpu.matmul %106, %17, %cst_46 {dimension_numbers = #tpu.dot_dimension_numbers<[1], [0], [0], [1], [0, 0, 1, 1], [], []>} : vector<1x32xf32>, vector<32x128xf32>, vector<1x128xf32> -> vector<1x128xf32>
    %cst_47 = arith.constant dense<0.000000e+00> : vector<1x128xf32>
    %108 = tpu.matmul %75, %18, %cst_47 {dimension_numbers = #tpu.dot_dimension_numbers<[1], [0], [0], [1], [0, 0, 1, 1], [], []>} : vector<1x32xf32>, vector<32x128xf32>, vector<1x128xf32> -> vector<1x128xf32>
    %109 = arith.addf %107, %108 : vector<1x128xf32>
    %110 = arith.addf %109, %2 : vector<1x128xf32>
    %111 = vector.extract_strided_slice %110 {offsets = [0, 0], sizes = [1, 32], strides = [1, 1]} : vector<1x128xf32> to vector<1x32xf32>
    %112 = arith.negf %111 : vector<1x32xf32>
    %113 = math.exp %112 : vector<1x32xf32>
    %cst_48 = arith.constant 1.000000e+00 : f32
    %114 = vector.broadcast %cst_48 : f32 to vector<1x32xf32>
    %115 = arith.addf %114, %113 : vector<1x32xf32>
    %116 = arith.divf %114, %115 : vector<1x32xf32>
    %117 = vector.extract_strided_slice %110 {offsets = [0, 32], sizes = [1, 32], strides = [1, 1]} : vector<1x128xf32> to vector<1x32xf32>
    %118 = arith.negf %117 : vector<1x32xf32>
    %119 = math.exp %118 : vector<1x32xf32>
    %cst_49 = arith.constant 1.000000e+00 : f32
    %120 = vector.broadcast %cst_49 : f32 to vector<1x32xf32>
    %121 = arith.addf %120, %119 : vector<1x32xf32>
    %122 = arith.divf %120, %121 : vector<1x32xf32>
    %123 = vector.extract_strided_slice %110 {offsets = [0, 64], sizes = [1, 32], strides = [1, 1]} : vector<1x128xf32> to vector<1x32xf32>
    %124 = vector.extract_strided_slice %110 {offsets = [0, 96], sizes = [1, 32], strides = [1, 1]} : vector<1x128xf32> to vector<1x32xf32>
    %125 = arith.mulf %116, %124 : vector<1x32xf32>
    %126 = arith.addf %123, %125 : vector<1x32xf32>
    %127 = math.tanh %126 : vector<1x32xf32>
    %cst_50 = arith.constant 1.000000e+00 : f32
    %128 = vector.broadcast %cst_50 : f32 to vector<1x32xf32>
    %129 = arith.subf %128, %122 : vector<1x32xf32>
    %130 = arith.mulf %129, %127 : vector<1x32xf32>
    %131 = arith.mulf %122, %75 : vector<1x32xf32>
    %132 = arith.addf %130, %131 : vector<1x32xf32>
    %133 = arith.index_cast %c1_i32 : i32 to index
    %c0_51 = arith.constant 0 : index
    %134 = vector.load %arg7[%133, %c0_51] : memref<8x32xf32, #tpu.memory_space<vmem>>, vector<1x32xf32>
    tpu.vector_store %arg7[%133, %c0_51], %132 {strides = array<i32>} : memref<8x32xf32, #tpu.memory_space<vmem>>, vector<1x32xf32>,
    %c2_i32 = arith.constant 2 : i32
    %cst_52 = arith.constant dense<0.000000e+00> : vector<1x128xf32>
    %135 = tpu.matmul %132, %16, %cst_52 {dimension_numbers = #tpu.dot_dimension_numbers<[1], [0], [0], [1], [0, 0, 1, 1], [], []>} : vector<1x32xf32>, vector<32x128xf32>, vector<1x128xf32> -> vector<1x128xf32>
    %136 = arith.index_cast %c2_i32 : i32 to index
    %c0_53 = arith.constant 0 : index
    %137 = vector.load %arg8[%136, %c0_53] : memref<8x128xf32, #tpu.memory_space<vmem>>, vector<1x128xf32>
    %138 = arith.addf %135, %137 : vector<1x128xf32>
    %cst_54 = arith.constant dense<0xFF800000> : vector<1xf32>
    %139 = vector.multi_reduction <maximumf>, %138, %cst_54 [1] : vector<1x128xf32> to vector<1xf32>
    %140 = vector.shape_cast %139 : vector<1xf32> to vector<1x1xf32>
    %141 = vector.broadcast %140 : vector<1x1xf32> to vector<1x128xf32>
    %142 = arith.subf %138, %141 : vector<1x128xf32>
    %143 = math.exp %142 : vector<1x128xf32>
    %cst_55 = arith.constant dense<0.000000e+00> : vector<1xf32>
    %144 = vector.multi_reduction <add>, %143, %cst_55 [1] : vector<1x128xf32> to vector<1xf32>
    %145 = vector.shape_cast %144 : vector<1xf32> to vector<1x1xf32>
    %146 = tpu.reciprocal %145 {approx = true} : vector<1x1xf32> -> vector<1x1xf32>
    %147 = arith.mulf %145, %146 : vector<1x1xf32>
    %cst_56 = arith.constant 2.000000e+00 : f32
    %148 = vector.broadcast %cst_56 : f32 to vector<1x1xf32>
    %149 = arith.subf %148, %147 : vector<1x1xf32>
    %150 = arith.mulf %146, %149 : vector<1x1xf32>
    %151 = vector.broadcast %150 : vector<1x1xf32> to vector<1x128xf32>
    %152 = arith.mulf %143, %151 : vector<1x128xf32>
    %153 = arith.index_cast %c2_i32 : i32 to index
    %c0_57 = arith.constant 0 : index
    %154 = vector.load %arg6[%153, %c0_57] : memref<8x128xf32, #tpu.memory_space<vmem>>, vector<1x128xf32>
    tpu.vector_store %arg6[%153, %c0_57], %152 {strides = array<i32>} : memref<8x128xf32, #tpu.memory_space<vmem>>, vector<1x128xf32>,
    %c0_58 = arith.constant 0 : index
    %c0_59 = arith.constant 0 : index
    %155 = vector.load %arg3[%c0_58, %c0_59] : memref<128x32xf32, #tpu.memory_space<vmem>>, vector<128x32xf32>
    %cst_60 = arith.constant dense<0.000000e+00> : vector<1x32xf32>
    %156 = tpu.matmul %152, %155, %cst_60 {dimension_numbers = #tpu.dot_dimension_numbers<[1], [0], [0], [1], [0, 0, 1, 1], [], []>} : vector<1x128xf32>, vector<128x32xf32>, vector<1x32xf32> -> vector<1x32xf32>
    %cst_61 = arith.constant dense<0.000000e+00> : vector<1x128xf32>
    %157 = tpu.matmul %156, %19, %cst_61 {dimension_numbers = #tpu.dot_dimension_numbers<[1], [0], [0], [1], [0, 0, 1, 1], [], []>} : vector<1x32xf32>, vector<32x128xf32>, vector<1x128xf32> -> vector<1x128xf32>
    %158 = arith.index_cast %c2_i32 : i32 to index
    %c0_62 = arith.constant 0 : index
    %159 = vector.load %arg9[%158, %c0_62] : memref<8x128xf32, #tpu.memory_space<vmem>>, vector<1x128xf32>
    %160 = arith.addf %157, %159 : vector<1x128xf32>
    %161 = vector.extract_strided_slice %160 {offsets = [0, 0], sizes = [1, 32], strides = [1, 1]} : vector<1x128xf32> to vector<1x32xf32>
    %cst_63 = arith.constant 0.000000e+00 : f32
    %162 = vector.broadcast %cst_63 : f32 to vector<1x32xf32>
    %163 = arith.maximumf %161, %162 : vector<1x32xf32>
    %cst_64 = arith.constant dense<0.000000e+00> : vector<1x128xf32>
    %164 = tpu.matmul %163, %17, %cst_64 {dimension_numbers = #tpu.dot_dimension_numbers<[1], [0], [0], [1], [0, 0, 1, 1], [], []>} : vector<1x32xf32>, vector<32x128xf32>, vector<1x128xf32> -> vector<1x128xf32>
    %cst_65 = arith.constant dense<0.000000e+00> : vector<1x128xf32>
    %165 = tpu.matmul %132, %18, %cst_65 {dimension_numbers = #tpu.dot_dimension_numbers<[1], [0], [0], [1], [0, 0, 1, 1], [], []>} : vector<1x32xf32>, vector<32x128xf32>, vector<1x128xf32> -> vector<1x128xf32>
    %166 = arith.addf %164, %165 : vector<1x128xf32>
    %167 = arith.addf %166, %2 : vector<1x128xf32>
    %168 = vector.extract_strided_slice %167 {offsets = [0, 0], sizes = [1, 32], strides = [1, 1]} : vector<1x128xf32> to vector<1x32xf32>
    %169 = arith.negf %168 : vector<1x32xf32>
    %170 = math.exp %169 : vector<1x32xf32>
    %cst_66 = arith.constant 1.000000e+00 : f32
    %171 = vector.broadcast %cst_66 : f32 to vector<1x32xf32>
    %172 = arith.addf %171, %170 : vector<1x32xf32>
    %173 = arith.divf %171, %172 : vector<1x32xf32>
    %174 = vector.extract_strided_slice %167 {offsets = [0, 32], sizes = [1, 32], strides = [1, 1]} : vector<1x128xf32> to vector<1x32xf32>
    %175 = arith.negf %174 : vector<1x32xf32>
    %176 = math.exp %175 : vector<1x32xf32>
    %cst_67 = arith.constant 1.000000e+00 : f32
    %177 = vector.broadcast %cst_67 : f32 to vector<1x32xf32>
    %178 = arith.addf %177, %176 : vector<1x32xf32>
    %179 = arith.divf %177, %178 : vector<1x32xf32>
    %180 = vector.extract_strided_slice %167 {offsets = [0, 64], sizes = [1, 32], strides = [1, 1]} : vector<1x128xf32> to vector<1x32xf32>
    %181 = vector.extract_strided_slice %167 {offsets = [0, 96], sizes = [1, 32], strides = [1, 1]} : vector<1x128xf32> to vector<1x32xf32>
    %182 = arith.mulf %173, %181 : vector<1x32xf32>
    %183 = arith.addf %180, %182 : vector<1x32xf32>
    %184 = math.tanh %183 : vector<1x32xf32>
    %cst_68 = arith.constant 1.000000e+00 : f32
    %185 = vector.broadcast %cst_68 : f32 to vector<1x32xf32>
    %186 = arith.subf %185, %179 : vector<1x32xf32>
    %187 = arith.mulf %186, %184 : vector<1x32xf32>
    %188 = arith.mulf %179, %132 : vector<1x32xf32>
    %189 = arith.addf %187, %188 : vector<1x32xf32>
    %190 = arith.index_cast %c2_i32 : i32 to index
    %c0_69 = arith.constant 0 : index
    %191 = vector.load %arg7[%190, %c0_69] : memref<8x32xf32, #tpu.memory_space<vmem>>, vector<1x32xf32>
    tpu.vector_store %arg7[%190, %c0_69], %189 {strides = array<i32>} : memref<8x32xf32, #tpu.memory_space<vmem>>, vector<1x32xf32>,
    %c3_i32 = arith.constant 3 : i32
    %cst_70 = arith.constant dense<0.000000e+00> : vector<1x128xf32>
    %192 = tpu.matmul %189, %16, %cst_70 {dimension_numbers = #tpu.dot_dimension_numbers<[1], [0], [0], [1], [0, 0, 1, 1], [], []>} : vector<1x32xf32>, vector<32x128xf32>, vector<1x128xf32> -> vector<1x128xf32>
    %193 = arith.index_cast %c3_i32 : i32 to index
    %c0_71 = arith.constant 0 : index
    %194 = vector.load %arg8[%193, %c0_71] : memref<8x128xf32, #tpu.memory_space<vmem>>, vector<1x128xf32>
    %195 = arith.addf %192, %194 : vector<1x128xf32>
    %cst_72 = arith.constant dense<0xFF800000> : vector<1xf32>
    %196 = vector.multi_reduction <maximumf>, %195, %cst_72 [1] : vector<1x128xf32> to vector<1xf32>
    %197 = vector.shape_cast %196 : vector<1xf32> to vector<1x1xf32>
    %198 = vector.broadcast %197 : vector<1x1xf32> to vector<1x128xf32>
    %199 = arith.subf %195, %198 : vector<1x128xf32>
    %200 = math.exp %199 : vector<1x128xf32>
    %cst_73 = arith.constant dense<0.000000e+00> : vector<1xf32>
    %201 = vector.multi_reduction <add>, %200, %cst_73 [1] : vector<1x128xf32> to vector<1xf32>
    %202 = vector.shape_cast %201 : vector<1xf32> to vector<1x1xf32>
    %203 = tpu.reciprocal %202 {approx = true} : vector<1x1xf32> -> vector<1x1xf32>
    %204 = arith.mulf %202, %203 : vector<1x1xf32>
    %cst_74 = arith.constant 2.000000e+00 : f32
    %205 = vector.broadcast %cst_74 : f32 to vector<1x1xf32>
    %206 = arith.subf %205, %204 : vector<1x1xf32>
    %207 = arith.mulf %203, %206 : vector<1x1xf32>
    %208 = vector.broadcast %207 : vector<1x1xf32> to vector<1x128xf32>
    %209 = arith.mulf %200, %208 : vector<1x128xf32>
    %210 = arith.index_cast %c3_i32 : i32 to index
    %c0_75 = arith.constant 0 : index
    %211 = vector.load %arg6[%210, %c0_75] : memref<8x128xf32, #tpu.memory_space<vmem>>, vector<1x128xf32>
    tpu.vector_store %arg6[%210, %c0_75], %209 {strides = array<i32>} : memref<8x128xf32, #tpu.memory_space<vmem>>, vector<1x128xf32>,
    %c0_76 = arith.constant 0 : index
    %c0_77 = arith.constant 0 : index
    %212 = vector.load %arg3[%c0_76, %c0_77] : memref<128x32xf32, #tpu.memory_space<vmem>>, vector<128x32xf32>
    %cst_78 = arith.constant dense<0.000000e+00> : vector<1x32xf32>
    %213 = tpu.matmul %209, %212, %cst_78 {dimension_numbers = #tpu.dot_dimension_numbers<[1], [0], [0], [1], [0, 0, 1, 1], [], []>} : vector<1x128xf32>, vector<128x32xf32>, vector<1x32xf32> -> vector<1x32xf32>
    %cst_79 = arith.constant dense<0.000000e+00> : vector<1x128xf32>
    %214 = tpu.matmul %213, %19, %cst_79 {dimension_numbers = #tpu.dot_dimension_numbers<[1], [0], [0], [1], [0, 0, 1, 1], [], []>} : vector<1x32xf32>, vector<32x128xf32>, vector<1x128xf32> -> vector<1x128xf32>
    %215 = arith.index_cast %c3_i32 : i32 to index
    %c0_80 = arith.constant 0 : index
    %216 = vector.load %arg9[%215, %c0_80] : memref<8x128xf32, #tpu.memory_space<vmem>>, vector<1x128xf32>
    %217 = arith.addf %214, %216 : vector<1x128xf32>
    %218 = vector.extract_strided_slice %217 {offsets = [0, 0], sizes = [1, 32], strides = [1, 1]} : vector<1x128xf32> to vector<1x32xf32>
    %cst_81 = arith.constant 0.000000e+00 : f32
    %219 = vector.broadcast %cst_81 : f32 to vector<1x32xf32>
    %220 = arith.maximumf %218, %219 : vector<1x32xf32>
    %cst_82 = arith.constant dense<0.000000e+00> : vector<1x128xf32>
    %221 = tpu.matmul %220, %17, %cst_82 {dimension_numbers = #tpu.dot_dimension_numbers<[1], [0], [0], [1], [0, 0, 1, 1], [], []>} : vector<1x32xf32>, vector<32x128xf32>, vector<1x128xf32> -> vector<1x128xf32>
    %cst_83 = arith.constant dense<0.000000e+00> : vector<1x128xf32>
    %222 = tpu.matmul %189, %18, %cst_83 {dimension_numbers = #tpu.dot_dimension_numbers<[1], [0], [0], [1], [0, 0, 1, 1], [], []>} : vector<1x32xf32>, vector<32x128xf32>, vector<1x128xf32> -> vector<1x128xf32>
    %223 = arith.addf %221, %222 : vector<1x128xf32>
    %224 = arith.addf %223, %2 : vector<1x128xf32>
    %225 = vector.extract_strided_slice %224 {offsets = [0, 0], sizes = [1, 32], strides = [1, 1]} : vector<1x128xf32> to vector<1x32xf32>
    %226 = arith.negf %225 : vector<1x32xf32>
    %227 = math.exp %226 : vector<1x32xf32>
    %cst_84 = arith.constant 1.000000e+00 : f32
    %228 = vector.broadcast %cst_84 : f32 to vector<1x32xf32>
    %229 = arith.addf %228, %227 : vector<1x32xf32>
    %230 = arith.divf %228, %229 : vector<1x32xf32>
    %231 = vector.extract_strided_slice %224 {offsets = [0, 32], sizes = [1, 32], strides = [1, 1]} : vector<1x128xf32> to vector<1x32xf32>
    %232 = arith.negf %231 : vector<1x32xf32>
    %233 = math.exp %232 : vector<1x32xf32>
    %cst_85 = arith.constant 1.000000e+00 : f32
    %234 = vector.broadcast %cst_85 : f32 to vector<1x32xf32>
    %235 = arith.addf %234, %233 : vector<1x32xf32>
    %236 = arith.divf %234, %235 : vector<1x32xf32>
    %237 = vector.extract_strided_slice %224 {offsets = [0, 64], sizes = [1, 32], strides = [1, 1]} : vector<1x128xf32> to vector<1x32xf32>
    %238 = vector.extract_strided_slice %224 {offsets = [0, 96], sizes = [1, 32], strides = [1, 1]} : vector<1x128xf32> to vector<1x32xf32>
    %239 = arith.mulf %230, %238 : vector<1x32xf32>
    %240 = arith.addf %237, %239 : vector<1x32xf32>
    %241 = math.tanh %240 : vector<1x32xf32>
    %cst_86 = arith.constant 1.000000e+00 : f32
    %242 = vector.broadcast %cst_86 : f32 to vector<1x32xf32>
    %243 = arith.subf %242, %236 : vector<1x32xf32>
    %244 = arith.mulf %243, %241 : vector<1x32xf32>
    %245 = arith.mulf %236, %189 : vector<1x32xf32>
    %246 = arith.addf %244, %245 : vector<1x32xf32>
    %247 = arith.index_cast %c3_i32 : i32 to index
    %c0_87 = arith.constant 0 : index
    %248 = vector.load %arg7[%247, %c0_87] : memref<8x32xf32, #tpu.memory_space<vmem>>, vector<1x32xf32>
    tpu.vector_store %arg7[%247, %c0_87], %246 {strides = array<i32>} : memref<8x32xf32, #tpu.memory_space<vmem>>, vector<1x32xf32>,
    %c4_i32 = arith.constant 4 : i32
    %cst_88 = arith.constant dense<0.000000e+00> : vector<1x128xf32>
    %249 = tpu.matmul %246, %16, %cst_88 {dimension_numbers = #tpu.dot_dimension_numbers<[1], [0], [0], [1], [0, 0, 1, 1], [], []>} : vector<1x32xf32>, vector<32x128xf32>, vector<1x128xf32> -> vector<1x128xf32>
    %250 = arith.index_cast %c4_i32 : i32 to index
    %c0_89 = arith.constant 0 : index
    %251 = vector.load %arg8[%250, %c0_89] : memref<8x128xf32, #tpu.memory_space<vmem>>, vector<1x128xf32>
    %252 = arith.addf %249, %251 : vector<1x128xf32>
    %cst_90 = arith.constant dense<0xFF800000> : vector<1xf32>
    %253 = vector.multi_reduction <maximumf>, %252, %cst_90 [1] : vector<1x128xf32> to vector<1xf32>
    %254 = vector.shape_cast %253 : vector<1xf32> to vector<1x1xf32>
    %255 = vector.broadcast %254 : vector<1x1xf32> to vector<1x128xf32>
    %256 = arith.subf %252, %255 : vector<1x128xf32>
    %257 = math.exp %256 : vector<1x128xf32>
    %cst_91 = arith.constant dense<0.000000e+00> : vector<1xf32>
    %258 = vector.multi_reduction <add>, %257, %cst_91 [1] : vector<1x128xf32> to vector<1xf32>
    %259 = vector.shape_cast %258 : vector<1xf32> to vector<1x1xf32>
    %260 = tpu.reciprocal %259 {approx = true} : vector<1x1xf32> -> vector<1x1xf32>
    %261 = arith.mulf %259, %260 : vector<1x1xf32>
    %cst_92 = arith.constant 2.000000e+00 : f32
    %262 = vector.broadcast %cst_92 : f32 to vector<1x1xf32>
    %263 = arith.subf %262, %261 : vector<1x1xf32>
    %264 = arith.mulf %260, %263 : vector<1x1xf32>
    %265 = vector.broadcast %264 : vector<1x1xf32> to vector<1x128xf32>
    %266 = arith.mulf %257, %265 : vector<1x128xf32>
    %267 = arith.index_cast %c4_i32 : i32 to index
    %c0_93 = arith.constant 0 : index
    %268 = vector.load %arg6[%267, %c0_93] : memref<8x128xf32, #tpu.memory_space<vmem>>, vector<1x128xf32>
    tpu.vector_store %arg6[%267, %c0_93], %266 {strides = array<i32>} : memref<8x128xf32, #tpu.memory_space<vmem>>, vector<1x128xf32>,
    %c0_94 = arith.constant 0 : index
    %c0_95 = arith.constant 0 : index
    %269 = vector.load %arg3[%c0_94, %c0_95] : memref<128x32xf32, #tpu.memory_space<vmem>>, vector<128x32xf32>
    %cst_96 = arith.constant dense<0.000000e+00> : vector<1x32xf32>
    %270 = tpu.matmul %266, %269, %cst_96 {dimension_numbers = #tpu.dot_dimension_numbers<[1], [0], [0], [1], [0, 0, 1, 1], [], []>} : vector<1x128xf32>, vector<128x32xf32>, vector<1x32xf32> -> vector<1x32xf32>
    %cst_97 = arith.constant dense<0.000000e+00> : vector<1x128xf32>
    %271 = tpu.matmul %270, %19, %cst_97 {dimension_numbers = #tpu.dot_dimension_numbers<[1], [0], [0], [1], [0, 0, 1, 1], [], []>} : vector<1x32xf32>, vector<32x128xf32>, vector<1x128xf32> -> vector<1x128xf32>
    %272 = arith.index_cast %c4_i32 : i32 to index
    %c0_98 = arith.constant 0 : index
    %273 = vector.load %arg9[%272, %c0_98] : memref<8x128xf32, #tpu.memory_space<vmem>>, vector<1x128xf32>
    %274 = arith.addf %271, %273 : vector<1x128xf32>
    %275 = vector.extract_strided_slice %274 {offsets = [0, 0], sizes = [1, 32], strides = [1, 1]} : vector<1x128xf32> to vector<1x32xf32>
    %cst_99 = arith.constant 0.000000e+00 : f32
    %276 = vector.broadcast %cst_99 : f32 to vector<1x32xf32>
    %277 = arith.maximumf %275, %276 : vector<1x32xf32>
    %cst_100 = arith.constant dense<0.000000e+00> : vector<1x128xf32>
    %278 = tpu.matmul %277, %17, %cst_100 {dimension_numbers = #tpu.dot_dimension_numbers<[1], [0], [0], [1], [0, 0, 1, 1], [], []>} : vector<1x32xf32>, vector<32x128xf32>, vector<1x128xf32> -> vector<1x128xf32>
    %cst_101 = arith.constant dense<0.000000e+00> : vector<1x128xf32>
    %279 = tpu.matmul %246, %18, %cst_101 {dimension_numbers = #tpu.dot_dimension_numbers<[1], [0], [0], [1], [0, 0, 1, 1], [], []>} : vector<1x32xf32>, vector<32x128xf32>, vector<1x128xf32> -> vector<1x128xf32>
    %280 = arith.addf %278, %279 : vector<1x128xf32>
    %281 = arith.addf %280, %2 : vector<1x128xf32>
    %282 = vector.extract_strided_slice %281 {offsets = [0, 0], sizes = [1, 32], strides = [1, 1]} : vector<1x128xf32> to vector<1x32xf32>
    %283 = arith.negf %282 : vector<1x32xf32>
    %284 = math.exp %283 : vector<1x32xf32>
    %cst_102 = arith.constant 1.000000e+00 : f32
    %285 = vector.broadcast %cst_102 : f32 to vector<1x32xf32>
    %286 = arith.addf %285, %284 : vector<1x32xf32>
    %287 = arith.divf %285, %286 : vector<1x32xf32>
    %288 = vector.extract_strided_slice %281 {offsets = [0, 32], sizes = [1, 32], strides = [1, 1]} : vector<1x128xf32> to vector<1x32xf32>
    %289 = arith.negf %288 : vector<1x32xf32>
    %290 = math.exp %289 : vector<1x32xf32>
    %cst_103 = arith.constant 1.000000e+00 : f32
    %291 = vector.broadcast %cst_103 : f32 to vector<1x32xf32>
    %292 = arith.addf %291, %290 : vector<1x32xf32>
    %293 = arith.divf %291, %292 : vector<1x32xf32>
    %294 = vector.extract_strided_slice %281 {offsets = [0, 64], sizes = [1, 32], strides = [1, 1]} : vector<1x128xf32> to vector<1x32xf32>
    %295 = vector.extract_strided_slice %281 {offsets = [0, 96], sizes = [1, 32], strides = [1, 1]} : vector<1x128xf32> to vector<1x32xf32>
    %296 = arith.mulf %287, %295 : vector<1x32xf32>
    %297 = arith.addf %294, %296 : vector<1x32xf32>
    %298 = math.tanh %297 : vector<1x32xf32>
    %cst_104 = arith.constant 1.000000e+00 : f32
    %299 = vector.broadcast %cst_104 : f32 to vector<1x32xf32>
    %300 = arith.subf %299, %293 : vector<1x32xf32>
    %301 = arith.mulf %300, %298 : vector<1x32xf32>
    %302 = arith.mulf %293, %246 : vector<1x32xf32>
    %303 = arith.addf %301, %302 : vector<1x32xf32>
    %304 = arith.index_cast %c4_i32 : i32 to index
    %c0_105 = arith.constant 0 : index
    %305 = vector.load %arg7[%304, %c0_105] : memref<8x32xf32, #tpu.memory_space<vmem>>, vector<1x32xf32>
    tpu.vector_store %arg7[%304, %c0_105], %303 {strides = array<i32>} : memref<8x32xf32, #tpu.memory_space<vmem>>, vector<1x32xf32>,
    %c5_i32 = arith.constant 5 : i32
    %cst_106 = arith.constant dense<0.000000e+00> : vector<1x128xf32>
    %306 = tpu.matmul %303, %16, %cst_106 {dimension_numbers = #tpu.dot_dimension_numbers<[1], [0], [0], [1], [0, 0, 1, 1], [], []>} : vector<1x32xf32>, vector<32x128xf32>, vector<1x128xf32> -> vector<1x128xf32>
    %307 = arith.index_cast %c5_i32 : i32 to index
    %c0_107 = arith.constant 0 : index
    %308 = vector.load %arg8[%307, %c0_107] : memref<8x128xf32, #tpu.memory_space<vmem>>, vector<1x128xf32>
    %309 = arith.addf %306, %308 : vector<1x128xf32>
    %cst_108 = arith.constant dense<0xFF800000> : vector<1xf32>
    %310 = vector.multi_reduction <maximumf>, %309, %cst_108 [1] : vector<1x128xf32> to vector<1xf32>
    %311 = vector.shape_cast %310 : vector<1xf32> to vector<1x1xf32>
    %312 = vector.broadcast %311 : vector<1x1xf32> to vector<1x128xf32>
    %313 = arith.subf %309, %312 : vector<1x128xf32>
    %314 = math.exp %313 : vector<1x128xf32>
    %cst_109 = arith.constant dense<0.000000e+00> : vector<1xf32>
    %315 = vector.multi_reduction <add>, %314, %cst_109 [1] : vector<1x128xf32> to vector<1xf32>
    %316 = vector.shape_cast %315 : vector<1xf32> to vector<1x1xf32>
    %317 = tpu.reciprocal %316 {approx = true} : vector<1x1xf32> -> vector<1x1xf32>
    %318 = arith.mulf %316, %317 : vector<1x1xf32>
    %cst_110 = arith.constant 2.000000e+00 : f32
    %319 = vector.broadcast %cst_110 : f32 to vector<1x1xf32>
    %320 = arith.subf %319, %318 : vector<1x1xf32>
    %321 = arith.mulf %317, %320 : vector<1x1xf32>
    %322 = vector.broadcast %321 : vector<1x1xf32> to vector<1x128xf32>
    %323 = arith.mulf %314, %322 : vector<1x128xf32>
    %324 = arith.index_cast %c5_i32 : i32 to index
    %c0_111 = arith.constant 0 : index
    %325 = vector.load %arg6[%324, %c0_111] : memref<8x128xf32, #tpu.memory_space<vmem>>, vector<1x128xf32>
    tpu.vector_store %arg6[%324, %c0_111], %323 {strides = array<i32>} : memref<8x128xf32, #tpu.memory_space<vmem>>, vector<1x128xf32>,
    %c0_112 = arith.constant 0 : index
    %c0_113 = arith.constant 0 : index
    %326 = vector.load %arg3[%c0_112, %c0_113] : memref<128x32xf32, #tpu.memory_space<vmem>>, vector<128x32xf32>
    %cst_114 = arith.constant dense<0.000000e+00> : vector<1x32xf32>
    %327 = tpu.matmul %323, %326, %cst_114 {dimension_numbers = #tpu.dot_dimension_numbers<[1], [0], [0], [1], [0, 0, 1, 1], [], []>} : vector<1x128xf32>, vector<128x32xf32>, vector<1x32xf32> -> vector<1x32xf32>
    %cst_115 = arith.constant dense<0.000000e+00> : vector<1x128xf32>
    %328 = tpu.matmul %327, %19, %cst_115 {dimension_numbers = #tpu.dot_dimension_numbers<[1], [0], [0], [1], [0, 0, 1, 1], [], []>} : vector<1x32xf32>, vector<32x128xf32>, vector<1x128xf32> -> vector<1x128xf32>
    %329 = arith.index_cast %c5_i32 : i32 to index
    %c0_116 = arith.constant 0 : index
    %330 = vector.load %arg9[%329, %c0_116] : memref<8x128xf32, #tpu.memory_space<vmem>>, vector<1x128xf32>
    %331 = arith.addf %328, %330 : vector<1x128xf32>
    %332 = vector.extract_strided_slice %331 {offsets = [0, 0], sizes = [1, 32], strides = [1, 1]} : vector<1x128xf32> to vector<1x32xf32>
    %cst_117 = arith.constant 0.000000e+00 : f32
    %333 = vector.broadcast %cst_117 : f32 to vector<1x32xf32>
    %334 = arith.maximumf %332, %333 : vector<1x32xf32>
    %cst_118 = arith.constant dense<0.000000e+00> : vector<1x128xf32>
    %335 = tpu.matmul %334, %17, %cst_118 {dimension_numbers = #tpu.dot_dimension_numbers<[1], [0], [0], [1], [0, 0, 1, 1], [], []>} : vector<1x32xf32>, vector<32x128xf32>, vector<1x128xf32> -> vector<1x128xf32>
    %cst_119 = arith.constant dense<0.000000e+00> : vector<1x128xf32>
    %336 = tpu.matmul %303, %18, %cst_119 {dimension_numbers = #tpu.dot_dimension_numbers<[1], [0], [0], [1], [0, 0, 1, 1], [], []>} : vector<1x32xf32>, vector<32x128xf32>, vector<1x128xf32> -> vector<1x128xf32>
    %337 = arith.addf %335, %336 : vector<1x128xf32>
    %338 = arith.addf %337, %2 : vector<1x128xf32>
    %339 = vector.extract_strided_slice %338 {offsets = [0, 0], sizes = [1, 32], strides = [1, 1]} : vector<1x128xf32> to vector<1x32xf32>
    %340 = arith.negf %339 : vector<1x32xf32>
    %341 = math.exp %340 : vector<1x32xf32>
    %cst_120 = arith.constant 1.000000e+00 : f32
    %342 = vector.broadcast %cst_120 : f32 to vector<1x32xf32>
    %343 = arith.addf %342, %341 : vector<1x32xf32>
    %344 = arith.divf %342, %343 : vector<1x32xf32>
    %345 = vector.extract_strided_slice %338 {offsets = [0, 32], sizes = [1, 32], strides = [1, 1]} : vector<1x128xf32> to vector<1x32xf32>
    %346 = arith.negf %345 : vector<1x32xf32>
    %347 = math.exp %346 : vector<1x32xf32>
    %cst_121 = arith.constant 1.000000e+00 : f32
    %348 = vector.broadcast %cst_121 : f32 to vector<1x32xf32>
    %349 = arith.addf %348, %347 : vector<1x32xf32>
    %350 = arith.divf %348, %349 : vector<1x32xf32>
    %351 = vector.extract_strided_slice %338 {offsets = [0, 64], sizes = [1, 32], strides = [1, 1]} : vector<1x128xf32> to vector<1x32xf32>
    %352 = vector.extract_strided_slice %338 {offsets = [0, 96], sizes = [1, 32], strides = [1, 1]} : vector<1x128xf32> to vector<1x32xf32>
    %353 = arith.mulf %344, %352 : vector<1x32xf32>
    %354 = arith.addf %351, %353 : vector<1x32xf32>
    %355 = math.tanh %354 : vector<1x32xf32>
    %cst_122 = arith.constant 1.000000e+00 : f32
    %356 = vector.broadcast %cst_122 : f32 to vector<1x32xf32>
    %357 = arith.subf %356, %350 : vector<1x32xf32>
    %358 = arith.mulf %357, %355 : vector<1x32xf32>
    %359 = arith.mulf %350, %303 : vector<1x32xf32>
    %360 = arith.addf %358, %359 : vector<1x32xf32>
    %361 = arith.index_cast %c5_i32 : i32 to index
    %c0_123 = arith.constant 0 : index
    %362 = vector.load %arg7[%361, %c0_123] : memref<8x32xf32, #tpu.memory_space<vmem>>, vector<1x32xf32>
    tpu.vector_store %arg7[%361, %c0_123], %360 {strides = array<i32>} : memref<8x32xf32, #tpu.memory_space<vmem>>, vector<1x32xf32>,
    %c6_i32 = arith.constant 6 : i32
    %cst_124 = arith.constant dense<0.000000e+00> : vector<1x128xf32>
    %363 = tpu.matmul %360, %16, %cst_124 {dimension_numbers = #tpu.dot_dimension_numbers<[1], [0], [0], [1], [0, 0, 1, 1], [], []>} : vector<1x32xf32>, vector<32x128xf32>, vector<1x128xf32> -> vector<1x128xf32>
    %364 = arith.index_cast %c6_i32 : i32 to index
    %c0_125 = arith.constant 0 : index
    %365 = vector.load %arg8[%364, %c0_125] : memref<8x128xf32, #tpu.memory_space<vmem>>, vector<1x128xf32>
    %366 = arith.addf %363, %365 : vector<1x128xf32>
    %cst_126 = arith.constant dense<0xFF800000> : vector<1xf32>
    %367 = vector.multi_reduction <maximumf>, %366, %cst_126 [1] : vector<1x128xf32> to vector<1xf32>
    %368 = vector.shape_cast %367 : vector<1xf32> to vector<1x1xf32>
    %369 = vector.broadcast %368 : vector<1x1xf32> to vector<1x128xf32>
    %370 = arith.subf %366, %369 : vector<1x128xf32>
    %371 = math.exp %370 : vector<1x128xf32>
    %cst_127 = arith.constant dense<0.000000e+00> : vector<1xf32>
    %372 = vector.multi_reduction <add>, %371, %cst_127 [1] : vector<1x128xf32> to vector<1xf32>
    %373 = vector.shape_cast %372 : vector<1xf32> to vector<1x1xf32>
    %374 = tpu.reciprocal %373 {approx = true} : vector<1x1xf32> -> vector<1x1xf32>
    %375 = arith.mulf %373, %374 : vector<1x1xf32>
    %cst_128 = arith.constant 2.000000e+00 : f32
    %376 = vector.broadcast %cst_128 : f32 to vector<1x1xf32>
    %377 = arith.subf %376, %375 : vector<1x1xf32>
    %378 = arith.mulf %374, %377 : vector<1x1xf32>
    %379 = vector.broadcast %378 : vector<1x1xf32> to vector<1x128xf32>
    %380 = arith.mulf %371, %379 : vector<1x128xf32>
    %381 = arith.index_cast %c6_i32 : i32 to index
    %c0_129 = arith.constant 0 : index
    %382 = vector.load %arg6[%381, %c0_129] : memref<8x128xf32, #tpu.memory_space<vmem>>, vector<1x128xf32>
    tpu.vector_store %arg6[%381, %c0_129], %380 {strides = array<i32>} : memref<8x128xf32, #tpu.memory_space<vmem>>, vector<1x128xf32>,
    %c0_130 = arith.constant 0 : index
    %c0_131 = arith.constant 0 : index
    %383 = vector.load %arg3[%c0_130, %c0_131] : memref<128x32xf32, #tpu.memory_space<vmem>>, vector<128x32xf32>
    %cst_132 = arith.constant dense<0.000000e+00> : vector<1x32xf32>
    %384 = tpu.matmul %380, %383, %cst_132 {dimension_numbers = #tpu.dot_dimension_numbers<[1], [0], [0], [1], [0, 0, 1, 1], [], []>} : vector<1x128xf32>, vector<128x32xf32>, vector<1x32xf32> -> vector<1x32xf32>
    %cst_133 = arith.constant dense<0.000000e+00> : vector<1x128xf32>
    %385 = tpu.matmul %384, %19, %cst_133 {dimension_numbers = #tpu.dot_dimension_numbers<[1], [0], [0], [1], [0, 0, 1, 1], [], []>} : vector<1x32xf32>, vector<32x128xf32>, vector<1x128xf32> -> vector<1x128xf32>
    %386 = arith.index_cast %c6_i32 : i32 to index
    %c0_134 = arith.constant 0 : index
    %387 = vector.load %arg9[%386, %c0_134] : memref<8x128xf32, #tpu.memory_space<vmem>>, vector<1x128xf32>
    %388 = arith.addf %385, %387 : vector<1x128xf32>
    %389 = vector.extract_strided_slice %388 {offsets = [0, 0], sizes = [1, 32], strides = [1, 1]} : vector<1x128xf32> to vector<1x32xf32>
    %cst_135 = arith.constant 0.000000e+00 : f32
    %390 = vector.broadcast %cst_135 : f32 to vector<1x32xf32>
    %391 = arith.maximumf %389, %390 : vector<1x32xf32>
    %cst_136 = arith.constant dense<0.000000e+00> : vector<1x128xf32>
    %392 = tpu.matmul %391, %17, %cst_136 {dimension_numbers = #tpu.dot_dimension_numbers<[1], [0], [0], [1], [0, 0, 1, 1], [], []>} : vector<1x32xf32>, vector<32x128xf32>, vector<1x128xf32> -> vector<1x128xf32>
    %cst_137 = arith.constant dense<0.000000e+00> : vector<1x128xf32>
    %393 = tpu.matmul %360, %18, %cst_137 {dimension_numbers = #tpu.dot_dimension_numbers<[1], [0], [0], [1], [0, 0, 1, 1], [], []>} : vector<1x32xf32>, vector<32x128xf32>, vector<1x128xf32> -> vector<1x128xf32>
    %394 = arith.addf %392, %393 : vector<1x128xf32>
    %395 = arith.addf %394, %2 : vector<1x128xf32>
    %396 = vector.extract_strided_slice %395 {offsets = [0, 0], sizes = [1, 32], strides = [1, 1]} : vector<1x128xf32> to vector<1x32xf32>
    %397 = arith.negf %396 : vector<1x32xf32>
    %398 = math.exp %397 : vector<1x32xf32>
    %cst_138 = arith.constant 1.000000e+00 : f32
    %399 = vector.broadcast %cst_138 : f32 to vector<1x32xf32>
    %400 = arith.addf %399, %398 : vector<1x32xf32>
    %401 = arith.divf %399, %400 : vector<1x32xf32>
    %402 = vector.extract_strided_slice %395 {offsets = [0, 32], sizes = [1, 32], strides = [1, 1]} : vector<1x128xf32> to vector<1x32xf32>
    %403 = arith.negf %402 : vector<1x32xf32>
    %404 = math.exp %403 : vector<1x32xf32>
    %cst_139 = arith.constant 1.000000e+00 : f32
    %405 = vector.broadcast %cst_139 : f32 to vector<1x32xf32>
    %406 = arith.addf %405, %404 : vector<1x32xf32>
    %407 = arith.divf %405, %406 : vector<1x32xf32>
    %408 = vector.extract_strided_slice %395 {offsets = [0, 64], sizes = [1, 32], strides = [1, 1]} : vector<1x128xf32> to vector<1x32xf32>
    %409 = vector.extract_strided_slice %395 {offsets = [0, 96], sizes = [1, 32], strides = [1, 1]} : vector<1x128xf32> to vector<1x32xf32>
    %410 = arith.mulf %401, %409 : vector<1x32xf32>
    %411 = arith.addf %408, %410 : vector<1x32xf32>
    %412 = math.tanh %411 : vector<1x32xf32>
    %cst_140 = arith.constant 1.000000e+00 : f32
    %413 = vector.broadcast %cst_140 : f32 to vector<1x32xf32>
    %414 = arith.subf %413, %407 : vector<1x32xf32>
    %415 = arith.mulf %414, %412 : vector<1x32xf32>
    %416 = arith.mulf %407, %360 : vector<1x32xf32>
    %417 = arith.addf %415, %416 : vector<1x32xf32>
    %418 = arith.index_cast %c6_i32 : i32 to index
    %c0_141 = arith.constant 0 : index
    %419 = vector.load %arg7[%418, %c0_141] : memref<8x32xf32, #tpu.memory_space<vmem>>, vector<1x32xf32>
    tpu.vector_store %arg7[%418, %c0_141], %417 {strides = array<i32>} : memref<8x32xf32, #tpu.memory_space<vmem>>, vector<1x32xf32>,
    %c7_i32 = arith.constant 7 : i32
    %cst_142 = arith.constant dense<0.000000e+00> : vector<1x128xf32>
    %420 = tpu.matmul %417, %16, %cst_142 {dimension_numbers = #tpu.dot_dimension_numbers<[1], [0], [0], [1], [0, 0, 1, 1], [], []>} : vector<1x32xf32>, vector<32x128xf32>, vector<1x128xf32> -> vector<1x128xf32>
    %421 = arith.index_cast %c7_i32 : i32 to index
    %c0_143 = arith.constant 0 : index
    %422 = vector.load %arg8[%421, %c0_143] : memref<8x128xf32, #tpu.memory_space<vmem>>, vector<1x128xf32>
    %423 = arith.addf %420, %422 : vector<1x128xf32>
    %cst_144 = arith.constant dense<0xFF800000> : vector<1xf32>
    %424 = vector.multi_reduction <maximumf>, %423, %cst_144 [1] : vector<1x128xf32> to vector<1xf32>
    %425 = vector.shape_cast %424 : vector<1xf32> to vector<1x1xf32>
    %426 = vector.broadcast %425 : vector<1x1xf32> to vector<1x128xf32>
    %427 = arith.subf %423, %426 : vector<1x128xf32>
    %428 = math.exp %427 : vector<1x128xf32>
    %cst_145 = arith.constant dense<0.000000e+00> : vector<1xf32>
    %429 = vector.multi_reduction <add>, %428, %cst_145 [1] : vector<1x128xf32> to vector<1xf32>
    %430 = vector.shape_cast %429 : vector<1xf32> to vector<1x1xf32>
    %431 = tpu.reciprocal %430 {approx = true} : vector<1x1xf32> -> vector<1x1xf32>
    %432 = arith.mulf %430, %431 : vector<1x1xf32>
    %cst_146 = arith.constant 2.000000e+00 : f32
    %433 = vector.broadcast %cst_146 : f32 to vector<1x1xf32>
    %434 = arith.subf %433, %432 : vector<1x1xf32>
    %435 = arith.mulf %431, %434 : vector<1x1xf32>
    %436 = vector.broadcast %435 : vector<1x1xf32> to vector<1x128xf32>
    %437 = arith.mulf %428, %436 : vector<1x128xf32>
    %438 = arith.index_cast %c7_i32 : i32 to index
    %c0_147 = arith.constant 0 : index
    %439 = vector.load %arg6[%438, %c0_147] : memref<8x128xf32, #tpu.memory_space<vmem>>, vector<1x128xf32>
    tpu.vector_store %arg6[%438, %c0_147], %437 {strides = array<i32>} : memref<8x128xf32, #tpu.memory_space<vmem>>, vector<1x128xf32>,
    %c0_148 = arith.constant 0 : index
    %c0_149 = arith.constant 0 : index
    %440 = vector.load %arg3[%c0_148, %c0_149] : memref<128x32xf32, #tpu.memory_space<vmem>>, vector<128x32xf32>
    %cst_150 = arith.constant dense<0.000000e+00> : vector<1x32xf32>
    %441 = tpu.matmul %437, %440, %cst_150 {dimension_numbers = #tpu.dot_dimension_numbers<[1], [0], [0], [1], [0, 0, 1, 1], [], []>} : vector<1x128xf32>, vector<128x32xf32>, vector<1x32xf32> -> vector<1x32xf32>
    %cst_151 = arith.constant dense<0.000000e+00> : vector<1x128xf32>
    %442 = tpu.matmul %441, %19, %cst_151 {dimension_numbers = #tpu.dot_dimension_numbers<[1], [0], [0], [1], [0, 0, 1, 1], [], []>} : vector<1x32xf32>, vector<32x128xf32>, vector<1x128xf32> -> vector<1x128xf32>
    %443 = arith.index_cast %c7_i32 : i32 to index
    %c0_152 = arith.constant 0 : index
    %444 = vector.load %arg9[%443, %c0_152] : memref<8x128xf32, #tpu.memory_space<vmem>>, vector<1x128xf32>
    %445 = arith.addf %442, %444 : vector<1x128xf32>
    %446 = vector.extract_strided_slice %445 {offsets = [0, 0], sizes = [1, 32], strides = [1, 1]} : vector<1x128xf32> to vector<1x32xf32>
    %cst_153 = arith.constant 0.000000e+00 : f32
    %447 = vector.broadcast %cst_153 : f32 to vector<1x32xf32>
    %448 = arith.maximumf %446, %447 : vector<1x32xf32>
    %cst_154 = arith.constant dense<0.000000e+00> : vector<1x128xf32>
    %449 = tpu.matmul %448, %17, %cst_154 {dimension_numbers = #tpu.dot_dimension_numbers<[1], [0], [0], [1], [0, 0, 1, 1], [], []>} : vector<1x32xf32>, vector<32x128xf32>, vector<1x128xf32> -> vector<1x128xf32>
    %cst_155 = arith.constant dense<0.000000e+00> : vector<1x128xf32>
    %450 = tpu.matmul %417, %18, %cst_155 {dimension_numbers = #tpu.dot_dimension_numbers<[1], [0], [0], [1], [0, 0, 1, 1], [], []>} : vector<1x32xf32>, vector<32x128xf32>, vector<1x128xf32> -> vector<1x128xf32>
    %451 = arith.addf %449, %450 : vector<1x128xf32>
    %452 = arith.addf %451, %2 : vector<1x128xf32>
    %453 = vector.extract_strided_slice %452 {offsets = [0, 0], sizes = [1, 32], strides = [1, 1]} : vector<1x128xf32> to vector<1x32xf32>
    %454 = arith.negf %453 : vector<1x32xf32>
    %455 = math.exp %454 : vector<1x32xf32>
    %cst_156 = arith.constant 1.000000e+00 : f32
    %456 = vector.broadcast %cst_156 : f32 to vector<1x32xf32>
    %457 = arith.addf %456, %455 : vector<1x32xf32>
    %458 = arith.divf %456, %457 : vector<1x32xf32>
    %459 = vector.extract_strided_slice %452 {offsets = [0, 32], sizes = [1, 32], strides = [1, 1]} : vector<1x128xf32> to vector<1x32xf32>
    %460 = arith.negf %459 : vector<1x32xf32>
    %461 = math.exp %460 : vector<1x32xf32>
    %cst_157 = arith.constant 1.000000e+00 : f32
    %462 = vector.broadcast %cst_157 : f32 to vector<1x32xf32>
    %463 = arith.addf %462, %461 : vector<1x32xf32>
    %464 = arith.divf %462, %463 : vector<1x32xf32>
    %465 = vector.extract_strided_slice %452 {offsets = [0, 64], sizes = [1, 32], strides = [1, 1]} : vector<1x128xf32> to vector<1x32xf32>
    %466 = vector.extract_strided_slice %452 {offsets = [0, 96], sizes = [1, 32], strides = [1, 1]} : vector<1x128xf32> to vector<1x32xf32>
    %467 = arith.mulf %458, %466 : vector<1x32xf32>
    %468 = arith.addf %465, %467 : vector<1x32xf32>
    %469 = math.tanh %468 : vector<1x32xf32>
    %cst_158 = arith.constant 1.000000e+00 : f32
    %470 = vector.broadcast %cst_158 : f32 to vector<1x32xf32>
    %471 = arith.subf %470, %464 : vector<1x32xf32>
    %472 = arith.mulf %471, %469 : vector<1x32xf32>
    %473 = arith.mulf %464, %417 : vector<1x32xf32>
    %474 = arith.addf %472, %473 : vector<1x32xf32>
    %475 = arith.index_cast %c7_i32 : i32 to index
    %c0_159 = arith.constant 0 : index
    %476 = vector.load %arg7[%475, %c0_159] : memref<8x32xf32, #tpu.memory_space<vmem>>, vector<1x32xf32>
    tpu.vector_store %arg7[%475, %c0_159], %474 {strides = array<i32>} : memref<8x32xf32, #tpu.memory_space<vmem>>, vector<1x32xf32>,
    %c8_i32 = arith.constant 8 : i32
    %c0_160 = arith.constant 0 : index
    %c0_161 = arith.constant 0 : index
    %477 = vector.load %arg7[%c0_160, %c0_161] : memref<8x32xf32, #tpu.memory_space<vmem>>, vector<8x32xf32>
    %c192 = arith.constant 192 : index
    %c0_162 = arith.constant 0 : index
    %478 = vector.load %arg4[%c192, %c0_162] : memref<232x128xf32, #tpu.memory_space<vmem>>, vector<32x128xf32>
    %cst_163 = arith.constant dense<0.000000e+00> : vector<8x128xf32>
    %479 = tpu.matmul %477, %478, %cst_163 {dimension_numbers = #tpu.dot_dimension_numbers<[1], [0], [0], [1], [0, 0, 1, 1], [], []>} : vector<8x32xf32>, vector<32x128xf32>, vector<8x128xf32> -> vector<8x128xf32>
    %480 = vector.broadcast %4 : vector<1x128xf32> to vector<8x128xf32>
    %481 = arith.addf %479, %480 : vector<8x128xf32>
    %cst_164 = arith.constant dense<0xFF800000> : vector<8xf32>
    %482 = vector.multi_reduction <maximumf>, %481, %cst_164 [1] : vector<8x128xf32> to vector<8xf32>
    %483 = vector.shape_cast %482 : vector<8xf32> to vector<8x1xf32>
    %484 = vector.broadcast %483 : vector<8x1xf32> to vector<8x128xf32>
    %485 = arith.subf %481, %484 : vector<8x128xf32>
    %486 = math.exp %485 : vector<8x128xf32>
    %cst_165 = arith.constant dense<0.000000e+00> : vector<8xf32>
    %487 = vector.multi_reduction <add>, %486, %cst_165 [1] : vector<8x128xf32> to vector<8xf32>
    %488 = vector.shape_cast %487 : vector<8xf32> to vector<8x1xf32>
    %489 = math.log %488 : vector<8x1xf32>
    %490 = vector.broadcast %489 : vector<8x1xf32> to vector<8x128xf32>
    %491 = arith.subf %485, %490 : vector<8x128xf32>
    %c0_166 = arith.constant 0 : index
    %c0_167 = arith.constant 0 : index
    %492 = vector.load %arg5[%c0_166, %c0_167] : memref<8x128xf32, #tpu.memory_space<vmem>>, vector<8x128xf32>
    tpu.vector_store %arg5[%c0_166, %c0_167], %491 {strides = array<i32>} : memref<8x128xf32, #tpu.memory_space<vmem>>, vector<8x128xf32>,
    return
  }
  func.func @transform_0(%arg0: i32) -> (i32, i32) {
    %c0_i32 = arith.constant 0 : i32
    %c0_i32_0 = arith.constant 0 : i32
    %c0_i32_1 = arith.constant 0 : i32
    return %c0_i32, %c0_i32_0 : i32, i32
  }
  func.func @transform_1(%arg0: i32) -> (i32, i32) {
    %c0_i32 = arith.constant 0 : i32
    %c0_i32_0 = arith.constant 0 : i32
    %c0_i32_1 = arith.constant 0 : i32
    return %c0_i32, %c0_i32_0 : i32, i32
  }
  func.func @transform_2(%arg0: i32) -> (i32, i32) {
    %c0_i32 = arith.constant 0 : i32
    %c0_i32_0 = arith.constant 0 : i32
    %c0_i32_1 = arith.constant 0 : i32
    return %c0_i32, %c0_i32_0 : i32, i32
  }
  func.func @transform_3(%arg0: i32) -> (i32, i32) {
    %c0_i32 = arith.constant 0 : i32
    %c0_i32_0 = arith.constant 0 : i32
    %c0_i32_1 = arith.constant 0 : i32
    return %c0_i32, %c0_i32_0 : i32, i32
  }
  func.func @transform_4(%arg0: i32) -> (i32, i32) {
    %c0_i32 = arith.constant 0 : i32
    %c0_i32_0 = arith.constant 0 : i32
    %c0_i32_1 = arith.constant 0 : i32
    return %c0_i32, %c0_i32_0 : i32, i32
  }
  func.func @transform_5(%arg0: i32) -> (i32, i32) {
    %c0_i32 = arith.constant 0 : i32
    %c0_i32_0 = arith.constant 0 : i32
    %c0_i32_1 = arith.constant 0 : i32
    return %c0_i32, %c0_i32_0 : i32, i32
  }
  func.func @transform_6(%arg0: i32) -> (i32, i32) {
    %c0_i32 = arith.constant 0 : i32
    %c0_i32_0 = arith.constant 0 : i32
    %c0_i32_1 = arith.constant 0 : i32
    return %c0_i32, %c0_i32_0 : i32, i32
  }
}

</mosaic_0001>

<bundles_post_ra>
// kernel: attn_decoder_decode.1
= control target key start
LH: loop header
LB: loop body
LE: loop exit
PB: predicated region body
PF: predicated region fallthrough
CT: control target
= control target key end

     0   :  { %12 = vsyncpa [#allocation5], 0  ;;  %v5319_v3 = vmov 0.0|0.0   ;;  %vm5320_vm0 = vmmov 0   ;;  %v5321_v6 = vmov 0.0   ;;  %s6141_s0 = inlined_call_operand.vmem [shape: f32[8,32], index: 0, kind: input, shape index: {}]   ;;  %s6142_s1 = inlined_call_operand.vmem [shape: f32[1,32], index: 1, kind: input, shape index: {}]   ;;  %s6143_s2 = inlined_call_operand.vmem [shape: f32[128,32], index: 2, kind: input, shape index: {}]   ;;  %s6144_s3 = inlined_call_operand.vmem [shape: f32[232,128], index: 3, kind: input, shape index: {}]   ;;  %s6145_s4 = inlined_call_operand.hbm [shape: f32[8,128], index: 4, kind: output, shape index: {0}]   ;;  %s6146_s5 = inlined_call_operand.hbm [shape: f32[8,128], index: 5, kind: output, shape index: {1}]   ;;  %s6147_s6 = inlined_call_operand.hbm [shape: f32[8,32], index: 6, kind: output, shape index: {2}]  }
   0x1   :  { %v24_v0 = vld [vmem:[%s6144_s3] sm:$0xff]  ;;  %v25_v1 = vld [vmem:[%s6144_s3 + $0x8] sm:$0xff]  ;;  %v26_v2 = vld [vmem:[%s6144_s3 + $0x10] sm:$0xff]  ;;  %4753 = vmatprep.subr.bf16.mxu0 %v5319_v3  ;;  %4096 = vmatprep.mubr.msk.f32.mxu0 %vm5320_vm0, %v5321_v6 }
   0x2   :  { %v4754_v4 = vpack.c.bf16 %v25_v1, %v24_v0  ;;  %v27_v5 = vld [vmem:[%s6144_s3 + $0x18] sm:$0xff]  ;;  %4759 = vmatprep.subr.bf16.mxu1 %v5319_v3  ;;  %4107 = vmatprep.mubr.msk.f32.mxu1 %vm5320_vm0, %v5321_v6 }
   0x3   :  { %v4757_v7 = vpack.c.bf16 %v27_v5, %v26_v2 }
   0x4   :  { %4755 = vmatpush3.bf16.msra.mxu0 %v4754_v4 }
   0x5   :  { %13 = vsyncpa [#allocation7], 0  ;;  %4756 = vmatprep.subr.bf16.mxu0 %v5319_v3  ;;  %v186_v8 = vld [vmem:[%s6144_s3 + $0x20] sm:$0xff]  ;;  %v187_v9 = vld [vmem:[%s6144_s3 + $0x28] sm:$0xff]  ;;  %vm32_vm1 = vcmask 261120   ;;  %v28_v16 = vlaneseq  ;;  %vm277_vm2 = vcmask 1040384  }
   0x6   :  { %v23_v10 = vld [vmem:[%s6141_s0] sm:$0xff]  ;;  %v5391_v11 = vpack.c.bf16 %v187_v9, %v186_v8  ;;  %v188_v12 = vld [vmem:[%s6144_s3 + $0x30] sm:$0xff]  ;;  %v189_v13 = vld [vmem:[%s6144_s3 + $0x38] sm:$0xff]  ;;  %s5322_s29 = smov 32   ;;  %s5323_s30 = smov 64   ;;  %vm637_vm3 = vcmask 253952  }
   0x7   :  { %v5402_v14 = vpack.c.bf16 %v189_v13, %v188_v12  ;;  %v5411_v15 = vld [vmem:[%s6142_s1] sm:$0x1]  ;;  %v5418_v17 = vshrl.u32 %v28_v16, 7  ;;  %v108_v30 = vld [vmem:[%s6144_s3 + $0x88] sm:$0xff]  ;;  %v109_v31 = vld [vmem:[%s6144_s3 + $0x90] sm:$0xff]  ;;  %s5324_s7 = smov 96  }
   0x8   :  { %4758 = vmatpush3.bf16.msra.mxu0 %v4757_v7  ;;  %v5424_v19 = vld [vmem:[%s6144_s3 + $0xe0] sm:$0xff]  ;;  %v110_v33 = vld [vmem:[%s6144_s3 + $0x98] sm:$0xff]  ;;  %v294_v36 = vld [vmem:[%s6143_s2 + $0x8] sm:$0xff] }
   0x9   :  { %4765 = vmatprep.subr.bf16.mxu0 %v5319_v3  ;;  %v30_v18 = vsub.s32 0, %v5418_v17  ;;  %v107_v29 = vld [vmem:[%s6144_s3 + $0x80] sm:$0xff]  ;;  %v4763_v34 = vpack.c.bf16 %v110_v33, %v109_v31  ;;  %v295_v38 = vld [vmem:[%s6143_s2 + $0x10] sm:$0xff]  ;;  %v296_v39 = vld [vmem:[%s6143_s2 + $0x18] sm:$0xff]  ;;  %v113_v8 = vsub.s32 2, %v5418_v17 }
   0xa   :  { %v4760_v32 = vpack.c.bf16 %v108_v30, %v107_v29  ;;  %v293_v35 = vld [vmem:[%s6143_s2] sm:$0xff]  ;;  %v5460_v40 = vpack.c.bf16 %v296_v39, %v295_v38  ;;  %v298_v42 = vld [vmem:[%s6143_s2 + $0x28] sm:$0xff]  ;;  %v299_v49 = vld [vmem:[%s6143_s2 + $0x30] sm:$0xff] }
   0xb   :  { %4097 = vmatmul.mubr.msk.f32.vlgmr.msra.gmra.mrb[0].mxu0 %vm32_vm1, %v23_v10  ;;  %v31_v20 = vrot.slane %v5424_v19, %v30_v18  ;;  %v5449_v37 = vpack.c.bf16 %v294_v36, %v293_v35  ;;  %v297_v41 = vld [vmem:[%s6143_s2 + $0x20] sm:$0xff]  ;;  %v300_v50 = vld [vmem:[%s6143_s2 + $0x38] sm:$0xff]  ;;  %v302_v53 = vld [vmem:[%s6143_s2 + $0x48] sm:$0xff]  ;;  %v114_v9 = vrot.slane %v5424_v19, %v113_v8 }
   0xc   :  { %4767 = vmatpush3.bf16.msra.mxu0 %v5391_v11  ;;  %4118 = vmatprep.mubr.msk.f32.mxu0 %vm5320_vm0, %v5321_v6  ;;  %v5472_v43 = vpack.c.bf16 %v298_v42, %v297_v41  ;;  %v5484_v51 = vpack.c.bf16 %v300_v50, %v299_v49  ;;  %v301_v52 = vld [vmem:[%s6143_s2 + $0x40] sm:$0xff]  ;;  %v303_v55 = vld [vmem:[%s6143_s2 + $0x50] sm:$0xff]  ;;  %v304_v56 = vld [vmem:[%s6143_s2 + $0x58] sm:$0xff]  ;;  %v5623_v49 = vrot.slane %v5424_v19, 1  ;;  %v627_v19 = vrot.slane %v5411_v15, %v30_v18 }
   0xd   :  { %4768 = vmatprep.subr.bf16.mxu0 %v5319_v3  ;;  %4761 = vmatpush3.bf16.msra.mxu1 %v4760_v32  ;;  %v5494_v54 = vpack.c.bf16 %v302_v53, %v301_v52  ;;  %v5504_v57 = vpack.c.bf16 %v304_v56, %v303_v55  ;;  %v305_v58 = vld [vmem:[%s6143_s2 + $0x60] sm:$0xff]  ;;  %v306_v59 = vld [vmem:[%s6143_s2 + $0x68] sm:$0xff]  ;;  %v307_v61 = vld [vmem:[%s6143_s2 + $0x70] sm:$0xff] }
   0xe   :  { %4762 = vmatprep.subr.bf16.mxu1 %v5319_v3  ;;  %v5514_v60 = vpack.c.bf16 %v306_v59, %v305_v58  ;;  %v308_v62 = vld [vmem:[%s6143_s2 + $0x78] sm:$0xff]  ;;  %v198_v0 = vld [vmem:[%s6144_s3 + $0xa0] sm:$0xff]  ;;  %v199_v1 = vld [vmem:[%s6144_s3 + $0xa8] sm:$0xff] }
   0xf   :  { %v5524_v63 = vpack.c.bf16 %v308_v62, %v307_v61  ;;  %v200_v2 = vld [vmem:[%s6144_s3 + $0xb0] sm:$0xff]  ;;  %v5537_v4 = vpack.c.bf16 %v199_v1, %v198_v0  ;;  %v201_v5 = vld [vmem:[%s6144_s3 + $0xb8] sm:$0xff]  ;;  %v190_v33 = vld [vmem:[%s6144_s3 + $0x40] sm:$0xff] }
  0x10   :  { %4770 = vmatpush3.bf16.msra.mxu0 %v5402_v14  ;;  %v5543_v7 = vpack.c.bf16 %v201_v5, %v200_v2  ;;  %v197_v29 = vld [vmem:[%s6144_s3 + $0x78] sm:$0xff]  ;;  %v192_v36 = vld [vmem:[%s6144_s3 + $0x50] sm:$0xff] }
  0x11   :  { %4795 = vmatprep.subr.bf16.mxu0 %v5319_v3  ;;  %4764 = vmatpush3.bf16.msra.mxu1 %v4763_v34  ;;  %v191_v34 = vld [vmem:[%s6144_s3 + $0x48] sm:$0xff]  ;;  %v193_v38 = vld [vmem:[%s6144_s3 + $0x58] sm:$0xff] }
  0x12   :  { %4771 = vmatprep.subr.bf16.mxu1 %v5319_v3  ;;  %v5596_v35 = vpack.c.bf16 %v191_v34, %v190_v33  ;;  %v5611_v39 = vpack.c.bf16 %v193_v38, %v192_v36 }
  0x13   :  { %4119 = vmatmul.mubr.msk.f32.vlgmr.msra.gmra.mrb[2].mxu0 %vm32_vm1, %v5411_v15 }
  0x14   :  { %4164 = vmatprep.mubr.msk.f32.mxu0 %vm5320_vm0, %v5321_v6  ;;  %4108 = vmatmul.mubr.msk.f32.vlgmr.msra.gmra.mrb[0].mxu1 %vm32_vm1, %v23_v10 }
  0x15   :  { %4773 = vmatpush3.bf16.msra.mxu1 %v5449_v37  ;;  %4153 = vmatprep.mubr.msk.f32.mxu1 %vm5320_vm0, %v5321_v6 }
  0x16   :  { %4774 = vmatprep.subr.bf16.mxu1 %v5319_v3  ;;  %4797 = vmatpush3.bf16.msra.mxu0 %v5537_v4 }
  0x17   :  { %4798 = vmatprep.subr.bf16.mxu0 %v5319_v3 }
  0x19   :  { %4776 = vmatpush3.bf16.msra.mxu1 %v5460_v40 }
  0x1a   :  { %4777 = vmatprep.subr.bf16.mxu1 %v5319_v3  ;;  %4800 = vmatpush3.bf16.msra.mxu0 %v5543_v7 }
  0x1b   :  { %4801 = vmatprep.subr.bf16.mxu0 %v5319_v3 }
  0x1d   :  { %4779 = vmatpush3.bf16.msra.mxu1 %v5472_v43 }
  0x1e   :  { %4780 = vmatprep.subr.bf16.mxu1 %v5319_v3 }
  0x21   :  { %4782 = vmatpush3.bf16.msra.mxu1 %v5484_v51 }
  0x22   :  { %4783 = vmatprep.subr.bf16.mxu1 %v5319_v3 }
  0x25   :  { %4785 = vmatpush3.bf16.msra.mxu1 %v5494_v54 }
  0x26   :  { %4786 = vmatprep.subr.bf16.mxu1 %v5319_v3 }
  0x29   :  { %4788 = vmatpush3.bf16.msra.mxu1 %v5504_v57 }
  0x2a   :  { %4789 = vmatprep.subr.bf16.mxu1 %v5319_v3 }
  0x2d   :  { %4791 = vmatpush3.bf16.msra.mxu1 %v5514_v60 }
  0x2e   :  { %4792 = vmatprep.subr.bf16.mxu1 %v5319_v3 }
  0x31   :  { %4794 = vmatpush3.bf16.msra.mxu1 %v5524_v63 }
  0x32   :  { %4819 = vmatprep.subr.bf16.mxu1 %v5319_v3 }
  0xde   :  { %v102_v21 = vpop.f32.mrb[0].mxu0 }
  0xdf   :  { %v103_v22 = vadd.f32 %v102_v21, %v31_v20  ;;  %v4098_v23 = vpop.f32.mrb[1].mxu0 }
  0xe1   :  { %106 = vst [vmem:[#allocation2] sm:$0xff] %v103_v22 }
  0xe6   :  { %v273_v24 = vpop.f32.mrb[2].mxu0 }
  0xe7   :  { %v4120_v25 = vpop.f32.mrb[3].mxu0  ;;  %v181_v10 = vpop.f32.mrb[0].mxu1 }
  0xe8   :  { %v203_v26 = vld [vmem:[#allocation2] sm:$0x1]  ;;  %v182_v12 = vadd.f32 %v181_v10, %v114_v9  ;;  %v4109_v13 = vpop.f32.mrb[1].mxu1  ;;  %v639_v18 = vld [vmem:[#allocation2 + $0x1] sm:$0x1] }
  0xe9   :  { %v274_v27 = vadd.f32 %v273_v24, %v203_v26  ;;  %v194_v25 = vld [vmem:[%s6144_s3 + $0x60] sm:$0xff]  ;;  %v195_v26 = vld [vmem:[%s6144_s3 + $0x68] sm:$0xff] }
  0xea   :  { %185 = vst [vmem:[#allocation3] sm:$0xff] %v182_v12 }
  0xeb   :  { %v278_v28 = vsel %vm277_vm2, %v274_v27, -inf }
  0xec   :  { %279 = vmax.xlane.f32.xlu0 %v278_v28  ;;  %v196_v28 = vld [vmem:[%s6144_s3 + $0x70] sm:$0xff] }
  0xed   :  { %v5584_v32 = vpack.c.bf16 %v197_v29, %v196_v28 }
  0xf1   :  { %v379_v41 = vld [vmem:[#allocation3] sm:$0x1] }
 0x179   :  { %v280_v44 = vpop.xlane.xlu0 %279 }
 0x17a   :  { %v281_v45 = vsub.f32 %v274_v27, %v280_v44  ;;  %v5574_v27 = vpack.c.bf16 %v195_v26, %v194_v25 }
 0x17c   :  { %v282_v46 = vmul.f32 1.442695, %v281_v45 }
 0x17e   :  { %5164 = vpow2.f32 %v282_v46 }
 0x188   :  { %v5165_v47 = vpop.eup %5164 }
 0x189   :  { %v284_v48 = vsel %vm277_vm2, %v5165_v47, 0.0 }
 0x18a   :  { %285 = vadd.xlane.f32.xlu0 %v284_v48 }
 0x217   :  { %v286_v16 = vpop.xlane.xlu0 %285 }
 0x218   :  { %5166 = vrcp.f32 %v286_v16 }
 0x222   :  { %v5167_v20 = vpop.eup %5166 }
 0x223   :  { %v288_v21 = vmul.f32 %v5167_v20, %v286_v16 }
 0x225   :  { %v289_v22 = vsub.f32 2.0, %v288_v21 }
 0x227   :  { %v290_v23 = vmul.f32 %v5167_v20, %v289_v22 }
 0x229   :  { %v291_v24 = vmul.f32 %v5165_v47, %v290_v23 }
 0x22b   :  { %292 = vst [vmem:[#allocation6] sm:$0x1] %v291_v24  ;;  %4154 = vmatmul.mubr.f32.vlgmr.msra.gmra.mrb[2].mxu1 %v291_v24 }
 0x22c   :  { %4821 = vmatpush3.bf16.msra.mxu1 %v5449_v37  ;;  %4232 = vmatprep.mubr.msk.f32.mxu1 %vm5320_vm0, %v5321_v6 }
 0x22d   :  { %4822 = vmatprep.subr.bf16.mxu1 %v5319_v3 }
 0x230   :  { %4824 = vmatpush3.bf16.msra.mxu1 %v5460_v40 }
 0x231   :  { %4825 = vmatprep.subr.bf16.mxu1 %v5319_v3 }
 0x234   :  { %4827 = vmatpush3.bf16.msra.mxu1 %v5472_v43 }
 0x235   :  { %4828 = vmatprep.subr.bf16.mxu1 %v5319_v3 }
 0x238   :  { %4830 = vmatpush3.bf16.msra.mxu1 %v5484_v51 }
 0x239   :  { %4831 = vmatprep.subr.bf16.mxu1 %v5319_v3 }
 0x23c   :  { %4833 = vmatpush3.bf16.msra.mxu1 %v5494_v54 }
 0x23d   :  { %4834 = vmatprep.subr.bf16.mxu1 %v5319_v3 }
 0x240   :  { %4836 = vmatpush3.bf16.msra.mxu1 %v5504_v57 }
 0x241   :  { %4837 = vmatprep.subr.bf16.mxu1 %v5319_v3 }
 0x244   :  { %4839 = vmatpush3.bf16.msra.mxu1 %v5514_v60 }
 0x245   :  { %4840 = vmatprep.subr.bf16.mxu1 %v5319_v3 }
 0x248   :  { %4842 = vmatpush3.bf16.msra.mxu1 %v5524_v63 }
 0x249   :  { %4867 = vmatprep.subr.bf16.mxu1 %v5319_v3 }
 0x2fe   :  { %v375_v30 = vpop.f32.mrb[2].mxu1 }
 0x2ff   :  { %v4155_v31 = vpop.f32.mrb[3].mxu1  ;;  %4165 = vmatmul.mubr.msk.f32.vlgmr.msra.gmra.mrb[4].mxu0 %vm32_vm1, %v375_v30 }
 0x300   :  { %4803 = vmatpush3.bf16.msra.mxu0 %v5574_v27  ;;  %4175 = vmatprep.mubr.msk.f32.mxu0 %vm5320_vm0, %v5321_v6 }
 0x301   :  { %4804 = vmatprep.subr.bf16.mxu0 %v5319_v3 }
 0x304   :  { %4806 = vmatpush3.bf16.msra.mxu0 %v5584_v32 }
 0x305   :  { %4807 = vmatprep.subr.bf16.mxu0 %v5319_v3 }
 0x307   :  { %4176 = vmatmul.mubr.msk.f32.vlgmr.msra.gmra.mrb[6].mxu0 %vm32_vm1, %v5411_v15 }
 0x308   :  { %4809 = vmatpush3.bf16.msra.mxu0 %v5596_v35  ;;  %4186 = vmatprep.mubr.msk.f32.mxu0 %vm5320_vm0, %v5321_v6 }
 0x309   :  { %4810 = vmatprep.subr.bf16.mxu0 %v5319_v3 }
 0x30c   :  { %4812 = vmatpush3.bf16.msra.mxu0 %v5611_v39 }
 0x30d   :  { %4813 = vmatprep.subr.bf16.mxu0 %v5319_v3 }
 0x3d2   :  { %v449_v42 = vpop.f32.mrb[4].mxu0 }
 0x3d3   :  { %v450_v44 = vadd.f32 %v449_v42, %v379_v41  ;;  %v4166_v45 = vpop.f32.mrb[5].mxu0 }
 0x3d5   :  { %v453_v46 = vmax.f32 %v450_v44, 0.0  ;;  %v813_v44 = vld [vmem:[#allocation3 + $0x1] sm:$0x1] }
 0x3d7   :  { %4187 = vmatmul.mubr.msk.f32.vlgmr.msra.gmra.mrb[8].mxu0 %vm32_vm1, %v453_v46 }
 0x3d8   :  { %4815 = vmatpush3.bf16.msra.mxu0 %v5391_v11  ;;  %4197 = vmatprep.mubr.msk.f32.mxu0 %vm5320_vm0, %v5321_v6 }
 0x3d9   :  { %4816 = vmatprep.subr.bf16.mxu0 %v5319_v3 }
 0x3da   :  { %v520_v47 = vpop.f32.mrb[6].mxu0 }
 0x3db   :  { %v4177_v48 = vpop.f32.mrb[7].mxu0 }
 0x3dc   :  { %4818 = vmatpush3.bf16.msra.mxu0 %v5402_v14 }
 0x3dd   :  { %4843 = vmatprep.subr.bf16.mxu0 %v5319_v3 }
 0x4aa   :  { %v593_v50 = vpop.f32.mrb[8].mxu0 }
 0x4ab   :  { %v594_v52 = vadd.f32 %v593_v50, %v520_v47  ;;  %v4188_v53 = vpop.f32.mrb[9].mxu0 }
 0x4ad   :  { %v600_v55 = vadd.f32 %v5623_v49, %v594_v52 }
 0x4af   :  { %608 = vrot.lane.b32.xlu1 %v600_v55, %s5322_s29  ;;  %v3740_v56 = vmul.f32 -1.442695, %v600_v55 }
 0x4b1   :  { %5168 = vpow2.f32 %v3740_v56 }
 0x4bb   :  { %v5169_v58 = vpop.eup %5168 }
 0x4bc   :  { %v604_v59 = vadd.f32 1.0, %v5169_v58 }
 0x4be   :  { %5170 = vrcp.f32 %v604_v59 }
 0x4c8   :  { %v5171_v61 = vpop.eup %5170 }
 0x4c9   :  { %v618_v9 = vsub.f32 1.0, %v5171_v61 }
 0x521   :  { %v609_v62 = vpop.permute.xlu1 %608 }
 0x522   :  { %v611_v0 = vmul.f32 %v5171_v61, %v609_v62 }
 0x524   :  { %613 = vrot.lane.b32.xlu1 %v611_v0, %s5323_s30 }
 0x528   :  { %628 = vrot.lane.b32.xlu1 %v627_v19, %s5322_s29 }
 0x596   :  { %v614_v1 = vpop.permute.xlu1 %613 }
 0x597   :  { %v616_v2 = vadd.f32 %v614_v1, %v600_v55 }
 0x599   :  { %5172 = vtanh.f32 %v616_v2 }
 0x59a   :  { %v629_v8 = vpop.permute.xlu1 %628 }
 0x59b   :  { %v631_v12 = vmul.f32 %v5171_v61, %v629_v8 }
 0x5a3   :  { %v5173_v5 = vpop.eup %5172 }
 0x5a4   :  { %620 = vrot.lane.b32.xlu0 %v5173_v5, %s5324_s7 }
 0x616   :  { %v621_v10 = vpop.permute.xlu0 %620 }
 0x617   :  { %v623_v13 = vmul.f32 %v621_v10, %v618_v9 }
 0x619   :  { %v5633_v16 = vadd.f32 %v631_v12, %v623_v13 }
 0x61b   :  { %634 = vrot.lane.b32.xlu1 %v5633_v16, %s5324_s7 }
 0x68d   :  { %v635_v15 = vpop.permute.xlu1 %634 }
 0x68e   :  { %638 = vst.msk [vmem:[#allocation8] sm:$0x1] %vm637_vm3, %v635_v15  ;;  %4198 = vmatmul.mubr.msk.f32.vlgmr.msra.gmra.mrb[10].mxu0 %vm32_vm1, %v635_v15 }
 0x68f   :  { %4845 = vmatpush3.bf16.msra.mxu0 %v5537_v4  ;;  %4243 = vmatprep.mubr.msk.f32.mxu0 %vm5320_vm0, %v5321_v6 }
 0x690   :  { %4846 = vmatprep.subr.bf16.mxu0 %v5319_v3 }
 0x693   :  { %4848 = vmatpush3.bf16.msra.mxu0 %v5543_v7 }
 0x694   :  { %4849 = vmatprep.subr.bf16.mxu0 %v5319_v3 }
 0x761   :  { %v708_v20 = vpop.f32.mrb[10].mxu0 }
 0x762   :  { %v709_v21 = vadd.f32 %v708_v20, %v639_v18  ;;  %v4199_v22 = vpop.f32.mrb[11].mxu0 }
 0x764   :  { %v712_v23 = vsel %vm277_vm2, %v709_v21, -inf }
 0x765   :  { %713 = vmax.xlane.f32.xlu1 %v712_v23 }
 0x7f2   :  { %v714_v24 = vpop.xlane.xlu1 %713 }
 0x7f3   :  { %v715_v25 = vsub.f32 %v709_v21, %v714_v24 }
 0x7f5   :  { %v716_v26 = vmul.f32 1.442695, %v715_v25 }
 0x7f7   :  { %5174 = vpow2.f32 %v716_v26 }
 0x801   :  { %v5175_v28 = vpop.eup %5174 }
 0x802   :  { %v718_v29 = vsel %vm277_vm2, %v5175_v28, 0.0 }
 0x803   :  { %719 = vadd.xlane.f32.xlu0 %v718_v29 }
 0x890   :  { %v720_v30 = vpop.xlane.xlu0 %719 }
 0x891   :  { %5176 = vrcp.f32 %v720_v30 }
 0x89b   :  { %v5177_v31 = vpop.eup %5176 }
 0x89c   :  { %v722_v33 = vmul.f32 %v5177_v31, %v720_v30 }
 0x89e   :  { %v723_v34 = vsub.f32 2.0, %v722_v33 }
 0x8a0   :  { %v724_v36 = vmul.f32 %v5177_v31, %v723_v34 }
 0x8a2   :  { %v725_v38 = vmul.f32 %v5175_v28, %v724_v36 }
 0x8a4   :  { %726 = vst [vmem:[#allocation6 + $0x1] sm:$0x1] %v725_v38  ;;  %4233 = vmatmul.mubr.f32.vlgmr.msra.gmra.mrb[4].mxu1 %v725_v38 }
 0x8a5   :  { %4869 = vmatpush3.bf16.msra.mxu1 %v5449_v37  ;;  %4311 = vmatprep.mubr.msk.f32.mxu1 %vm5320_vm0, %v5321_v6 }
 0x8a6   :  { %4870 = vmatprep.subr.bf16.mxu1 %v5319_v3 }
 0x8a9   :  { %4872 = vmatpush3.bf16.msra.mxu1 %v5460_v40 }
 0x8aa   :  { %4873 = vmatprep.subr.bf16.mxu1 %v5319_v3 }
 0x8ad   :  { %4875 = vmatpush3.bf16.msra.mxu1 %v5472_v43 }
 0x8ae   :  { %4876 = vmatprep.subr.bf16.mxu1 %v5319_v3 }
 0x8b1   :  { %4878 = vmatpush3.bf16.msra.mxu1 %v5484_v51 }
 0x8b2   :  { %4879 = vmatprep.subr.bf16.mxu1 %v5319_v3 }
 0x8b5   :  { %4881 = vmatpush3.bf16.msra.mxu1 %v5494_v54 }
 0x8b6   :  { %4882 = vmatprep.subr.bf16.mxu1 %v5319_v3 }
 0x8b9   :  { %4884 = vmatpush3.bf16.msra.mxu1 %v5504_v57 }
 0x8ba   :  { %4885 = vmatprep.subr.bf16.mxu1 %v5319_v3 }
 0x8bd   :  { %4887 = vmatpush3.bf16.msra.mxu1 %v5514_v60 }
 0x8be   :  { %4888 = vmatprep.subr.bf16.mxu1 %v5319_v3 }
 0x8c1   :  { %4890 = vmatpush3.bf16.msra.mxu1 %v5524_v63 }
 0x8c2   :  { %4915 = vmatprep.subr.bf16.mxu1 %v5319_v3 }
 0x977   :  { %v809_v41 = vpop.f32.mrb[4].mxu1 }
 0x978   :  { %v4234_v42 = vpop.f32.mrb[5].mxu1  ;;  %4244 = vmatmul.mubr.msk.f32.vlgmr.msra.gmra.mrb[12].mxu0 %vm32_vm1, %v809_v41 }
 0x979   :  { %4851 = vmatpush3.bf16.msra.mxu0 %v5574_v27  ;;  %4254 = vmatprep.mubr.msk.f32.mxu0 %vm5320_vm0, %v5321_v6 }
 0x97a   :  { %4852 = vmatprep.subr.bf16.mxu0 %v5319_v3 }
 0x97d   :  { %4854 = vmatpush3.bf16.msra.mxu0 %v5584_v32 }
 0x97e   :  { %4855 = vmatprep.subr.bf16.mxu0 %v5319_v3 }
 0x980   :  { %4255 = vmatmul.mubr.msk.f32.vlgmr.msra.gmra.mrb[14].mxu0 %vm32_vm1, %v635_v15 }
 0x981   :  { %4857 = vmatpush3.bf16.msra.mxu0 %v5596_v35  ;;  %4265 = vmatprep.mubr.msk.f32.mxu0 %vm5320_vm0, %v5321_v6 }
 0x982   :  { %4858 = vmatprep.subr.bf16.mxu0 %v5319_v3 }
 0x985   :  { %4860 = vmatpush3.bf16.msra.mxu0 %v5611_v39 }
 0x986   :  { %4861 = vmatprep.subr.bf16.mxu0 %v5319_v3 }
 0xa4b   :  { %v883_v45 = vpop.f32.mrb[12].mxu0 }
 0xa4c   :  { %v884_v46 = vadd.f32 %v883_v45, %v813_v44  ;;  %v4245_v47 = vpop.f32.mrb[13].mxu0  ;;  %v1236_v44 = vld [vmem:[#allocation3 + $0x2] sm:$0x1] }
 0xa4e   :  { %v887_v48 = vmax.f32 %v884_v46, 0.0 }
 0xa50   :  { %4266 = vmatmul.mubr.msk.f32.vlgmr.msra.gmra.mrb[16].mxu0 %vm32_vm1, %v887_v48 }
 0xa51   :  { %4863 = vmatpush3.bf16.msra.mxu0 %v5391_v11  ;;  %4276 = vmatprep.mubr.msk.f32.mxu0 %vm5320_vm0, %v5321_v6 }
 0xa52   :  { %4864 = vmatprep.subr.bf16.mxu0 %v5319_v3 }
 0xa53   :  { %v954_v50 = vpop.f32.mrb[14].mxu0 }
 0xa54   :  { %v4256_v52 = vpop.f32.mrb[15].mxu0 }
 0xa55   :  { %4866 = vmatpush3.bf16.msra.mxu0 %v5402_v14 }
 0xa56   :  { %4891 = vmatprep.subr.bf16.mxu0 %v5319_v3 }
 0xb23   :  { %v1027_v53 = vpop.f32.mrb[16].mxu0 }
 0xb24   :  { %v1028_v55 = vadd.f32 %v1027_v53, %v954_v50  ;;  %v4267_v56 = vpop.f32.mrb[17].mxu0 }
 0xb26   :  { %v1031_v58 = vadd.f32 %v1028_v55, %v5623_v49 }
 0xb28   :  { %1039 = vrot.lane.b32.xlu1 %v1031_v58, %s5322_s29  ;;  %v3745_v59 = vmul.f32 -1.442695, %v1031_v58 }
 0xb2a   :  { %5178 = vpow2.f32 %v3745_v59 }
 0xb34   :  { %v5179_v61 = vpop.eup %5178 }
 0xb35   :  { %v1035_v62 = vadd.f32 1.0, %v5179_v61 }
 0xb37   :  { %5180 = vrcp.f32 %v1035_v62 }
 0xb41   :  { %v5181_v0 = vpop.eup %5180 }
 0xb42   :  { %v1049_v9 = vsub.f32 1.0, %v5181_v0  ;;  %v1055_v12 = vmul.f32 %v5181_v0, %v5633_v16  ;;  %v1062_v16 = vld [vmem:[#allocation2 + $0x2] sm:$0x1] }
 0xb9a   :  { %v1040_v19 = vpop.permute.xlu1 %1039 }
 0xb9b   :  { %v1042_v1 = vmul.f32 %v5181_v0, %v1040_v19 }
 0xb9d   :  { %1044 = vrot.lane.b32.xlu0 %v1042_v1, %s5323_s30 }
 0xc0f   :  { %v1045_v2 = vpop.permute.xlu0 %1044 }
 0xc10   :  { %v1047_v5 = vadd.f32 %v1045_v2, %v1031_v58 }
 0xc12   :  { %5182 = vtanh.f32 %v1047_v5 }
 0xc1c   :  { %v5183_v8 = vpop.eup %5182 }
 0xc1d   :  { %1051 = vrot.lane.b32.xlu1 %v5183_v8, %s5324_s7 }
 0xc8f   :  { %v1052_v10 = vpop.permute.xlu1 %1051 }
 0xc90   :  { %v1054_v13 = vmul.f32 %v1052_v10, %v1049_v9 }
 0xc92   :  { %v5691_v15 = vadd.f32 %v1055_v12, %v1054_v13 }
 0xc94   :  { %1058 = vrot.lane.b32.xlu1 %v5691_v15, %s5324_s7 }
 0xd06   :  { %v1059_v18 = vpop.permute.xlu1 %1058 }
 0xd07   :  { %1061 = vst.msk [vmem:[#allocation8 + $0x1] sm:$0x1] %vm637_vm3, %v1059_v18  ;;  %4277 = vmatmul.mubr.msk.f32.vlgmr.msra.gmra.mrb[18].mxu0 %vm32_vm1, %v1059_v18 }
 0xd08   :  { %4893 = vmatpush3.bf16.msra.mxu0 %v5537_v4  ;;  %4322 = vmatprep.mubr.msk.f32.mxu0 %vm5320_vm0, %v5321_v6 }
 0xd09   :  { %4894 = vmatprep.subr.bf16.mxu0 %v5319_v3 }
 0xd0c   :  { %4896 = vmatpush3.bf16.msra.mxu0 %v5543_v7 }
 0xd0d   :  { %4897 = vmatprep.subr.bf16.mxu0 %v5319_v3 }
 0xdda   :  { %v1131_v20 = vpop.f32.mrb[18].mxu0 }
 0xddb   :  { %v1132_v21 = vadd.f32 %v1131_v20, %v1062_v16  ;;  %v4278_v22 = vpop.f32.mrb[19].mxu0 }
 0xddd   :  { %v1135_v23 = vsel %vm277_vm2, %v1132_v21, -inf }
 0xdde   :  { %1136 = vmax.xlane.f32.xlu1 %v1135_v23 }
 0xe6b   :  { %v1137_v24 = vpop.xlane.xlu1 %1136 }
 0xe6c   :  { %v1138_v25 = vsub.f32 %v1132_v21, %v1137_v24 }
 0xe6e   :  { %v1139_v26 = vmul.f32 1.442695, %v1138_v25 }
 0xe70   :  { %5184 = vpow2.f32 %v1139_v26 }
 0xe7a   :  { %v5185_v28 = vpop.eup %5184 }
 0xe7b   :  { %v1141_v29 = vsel %vm277_vm2, %v5185_v28, 0.0 }
 0xe7c   :  { %1142 = vadd.xlane.f32.xlu0 %v1141_v29 }
 0xf09   :  { %v1143_v30 = vpop.xlane.xlu0 %1142 }
 0xf0a   :  { %5186 = vrcp.f32 %v1143_v30 }
 0xf14   :  { %v5187_v31 = vpop.eup %5186 }
 0xf15   :  { %v1145_v33 = vmul.f32 %v5187_v31, %v1143_v30 }
 0xf17   :  { %v1146_v34 = vsub.f32 2.0, %v1145_v33 }
 0xf19   :  { %v1147_v36 = vmul.f32 %v5187_v31, %v1146_v34 }
 0xf1b   :  { %v1148_v38 = vmul.f32 %v5185_v28, %v1147_v36 }
 0xf1d   :  { %1149 = vst [vmem:[#allocation6 + $0x2] sm:$0x1] %v1148_v38  ;;  %4312 = vmatmul.mubr.f32.vlgmr.msra.gmra.mrb[6].mxu1 %v1148_v38 }
 0xf1e   :  { %4917 = vmatpush3.bf16.msra.mxu1 %v5449_v37  ;;  %4390 = vmatprep.mubr.msk.f32.mxu1 %vm5320_vm0, %v5321_v6 }
 0xf1f   :  { %4918 = vmatprep.subr.bf16.mxu1 %v5319_v3 }
 0xf22   :  { %4920 = vmatpush3.bf16.msra.mxu1 %v5460_v40 }
 0xf23   :  { %4921 = vmatprep.subr.bf16.mxu1 %v5319_v3 }
 0xf26   :  { %4923 = vmatpush3.bf16.msra.mxu1 %v5472_v43 }
 0xf27   :  { %4924 = vmatprep.subr.bf16.mxu1 %v5319_v3 }
 0xf2a   :  { %4926 = vmatpush3.bf16.msra.mxu1 %v5484_v51 }
 0xf2b   :  { %4927 = vmatprep.subr.bf16.mxu1 %v5319_v3 }
 0xf2e   :  { %4929 = vmatpush3.bf16.msra.mxu1 %v5494_v54 }
 0xf2f   :  { %4930 = vmatprep.subr.bf16.mxu1 %v5319_v3 }
 0xf32   :  { %4932 = vmatpush3.bf16.msra.mxu1 %v5504_v57 }
 0xf33   :  { %4933 = vmatprep.subr.bf16.mxu1 %v5319_v3 }
 0xf36   :  { %4935 = vmatpush3.bf16.msra.mxu1 %v5514_v60 }
 0xf37   :  { %4936 = vmatprep.subr.bf16.mxu1 %v5319_v3 }
 0xf3a   :  { %4938 = vmatpush3.bf16.msra.mxu1 %v5524_v63 }
 0xf3b   :  { %4963 = vmatprep.subr.bf16.mxu1 %v5319_v3 }
 0xff0   :  { %v1232_v41 = vpop.f32.mrb[6].mxu1 }
 0xff1   :  { %v4313_v42 = vpop.f32.mrb[7].mxu1  ;;  %4323 = vmatmul.mubr.msk.f32.vlgmr.msra.gmra.mrb[20].mxu0 %vm32_vm1, %v1232_v41 }
 0xff2   :  { %4899 = vmatpush3.bf16.msra.mxu0 %v5574_v27  ;;  %4333 = vmatprep.mubr.msk.f32.mxu0 %vm5320_vm0, %v5321_v6 }
 0xff3   :  { %4900 = vmatprep.subr.bf16.mxu0 %v5319_v3 }
 0xff6   :  { %4902 = vmatpush3.bf16.msra.mxu0 %v5584_v32 }
 0xff7   :  { %4903 = vmatprep.subr.bf16.mxu0 %v5319_v3 }
 0xff9   :  { %4334 = vmatmul.mubr.msk.f32.vlgmr.msra.gmra.mrb[22].mxu0 %vm32_vm1, %v1059_v18 }
 0xffa   :  { %4905 = vmatpush3.bf16.msra.mxu0 %v5596_v35  ;;  %4344 = vmatprep.mubr.msk.f32.mxu0 %vm5320_vm0, %v5321_v6 }
 0xffb   :  { %4906 = vmatprep.subr.bf16.mxu0 %v5319_v3 }
 0xffe   :  { %4908 = vmatpush3.bf16.msra.mxu0 %v5611_v39 }
 0xfff   :  { %4909 = vmatprep.subr.bf16.mxu0 %v5319_v3 }
0x10c4   :  { %v1306_v45 = vpop.f32.mrb[20].mxu0 }
0x10c5   :  { %v1307_v46 = vadd.f32 %v1306_v45, %v1236_v44  ;;  %v4324_v47 = vpop.f32.mrb[21].mxu0 }
0x10c7   :  { %v1310_v48 = vmax.f32 %v1307_v46, 0.0 }
0x10c9   :  { %4345 = vmatmul.mubr.msk.f32.vlgmr.msra.gmra.mrb[24].mxu0 %vm32_vm1, %v1310_v48 }
0x10ca   :  { %4911 = vmatpush3.bf16.msra.mxu0 %v5391_v11  ;;  %4355 = vmatprep.mubr.msk.f32.mxu0 %vm5320_vm0, %v5321_v6 }
0x10cb   :  { %4912 = vmatprep.subr.bf16.mxu0 %v5319_v3 }
0x10cc   :  { %v1377_v50 = vpop.f32.mrb[22].mxu0 }
0x10cd   :  { %v4335_v52 = vpop.f32.mrb[23].mxu0 }
0x10ce   :  { %4914 = vmatpush3.bf16.msra.mxu0 %v5402_v14 }
0x10cf   :  { %4939 = vmatprep.subr.bf16.mxu0 %v5319_v3 }
0x119c   :  { %v1450_v53 = vpop.f32.mrb[24].mxu0 }
0x119d   :  { %v1451_v55 = vadd.f32 %v1450_v53, %v1377_v50  ;;  %v4346_v56 = vpop.f32.mrb[25].mxu0 }
0x119f   :  { %v1454_v58 = vadd.f32 %v1451_v55, %v5623_v49 }
0x11a1   :  { %1462 = vrot.lane.b32.xlu1 %v1454_v58, %s5322_s29  ;;  %v3750_v59 = vmul.f32 -1.442695, %v1454_v58 }
0x11a3   :  { %5188 = vpow2.f32 %v3750_v59 }
0x11ad   :  { %v5189_v61 = vpop.eup %5188 }
0x11ae   :  { %v1458_v62 = vadd.f32 1.0, %v5189_v61 }
0x11b0   :  { %5190 = vrcp.f32 %v1458_v62 }
0x11ba   :  { %v5191_v0 = vpop.eup %5190 }
0x11bb   :  { %v1472_v9 = vsub.f32 1.0, %v5191_v0  ;;  %v1478_v12 = vmul.f32 %v5191_v0, %v5691_v15  ;;  %v1485_v15 = vld [vmem:[#allocation2 + $0x3] sm:$0x1] }
0x1213   :  { %v1463_v19 = vpop.permute.xlu1 %1462 }
0x1214   :  { %v1465_v1 = vmul.f32 %v5191_v0, %v1463_v19 }
0x1216   :  { %1467 = vrot.lane.b32.xlu0 %v1465_v1, %s5323_s30 }
0x1288   :  { %v1468_v2 = vpop.permute.xlu0 %1467 }
0x1289   :  { %v1470_v5 = vadd.f32 %v1468_v2, %v1454_v58 }
0x128b   :  { %5192 = vtanh.f32 %v1470_v5  ;;  %v1908_v5 = vld [vmem:[#allocation2 + $0x4] sm:$0x1] }
0x1295   :  { %v5193_v8 = vpop.eup %5192 }
0x1296   :  { %1474 = vrot.lane.b32.xlu1 %v5193_v8, %s5324_s7 }
0x1308   :  { %v1475_v10 = vpop.permute.xlu1 %1474 }
0x1309   :  { %v1477_v13 = vmul.f32 %v1475_v10, %v1472_v9 }
0x130b   :  { %v5749_v18 = vadd.f32 %v1478_v12, %v1477_v13 }
0x130d   :  { %1481 = vrot.lane.b32.xlu1 %v5749_v18, %s5324_s7 }
0x137f   :  { %v1482_v16 = vpop.permute.xlu1 %1481 }
0x1380   :  { %1484 = vst.msk [vmem:[#allocation8 + $0x2] sm:$0x1] %vm637_vm3, %v1482_v16  ;;  %4356 = vmatmul.mubr.msk.f32.vlgmr.msra.gmra.mrb[26].mxu0 %vm32_vm1, %v1482_v16 }
0x1381   :  { %4941 = vmatpush3.bf16.msra.mxu0 %v5537_v4  ;;  %4401 = vmatprep.mubr.msk.f32.mxu0 %vm5320_vm0, %v5321_v6 }
0x1382   :  { %4942 = vmatprep.subr.bf16.mxu0 %v5319_v3 }
0x1385   :  { %4944 = vmatpush3.bf16.msra.mxu0 %v5543_v7 }
0x1386   :  { %4945 = vmatprep.subr.bf16.mxu0 %v5319_v3 }
0x1453   :  { %v1554_v20 = vpop.f32.mrb[26].mxu0 }
0x1454   :  { %v1555_v21 = vadd.f32 %v1554_v20, %v1485_v15  ;;  %v4357_v22 = vpop.f32.mrb[27].mxu0 }
0x1456   :  { %v1558_v23 = vsel %vm277_vm2, %v1555_v21, -inf }
0x1457   :  { %1559 = vmax.xlane.f32.xlu0 %v1558_v23 }
0x14e4   :  { %v1560_v24 = vpop.xlane.xlu0 %1559 }
0x14e5   :  { %v1561_v25 = vsub.f32 %v1555_v21, %v1560_v24 }
0x14e7   :  { %v1562_v26 = vmul.f32 1.442695, %v1561_v25 }
0x14e9   :  { %5194 = vpow2.f32 %v1562_v26 }
0x14f3   :  { %v5195_v28 = vpop.eup %5194 }
0x14f4   :  { %v1564_v29 = vsel %vm277_vm2, %v5195_v28, 0.0 }
0x14f5   :  { %1565 = vadd.xlane.f32.xlu1 %v1564_v29 }
0x1582   :  { %v1566_v30 = vpop.xlane.xlu1 %1565 }
0x1583   :  { %5196 = vrcp.f32 %v1566_v30 }
0x158d   :  { %v5197_v31 = vpop.eup %5196 }
0x158e   :  { %v1568_v33 = vmul.f32 %v5197_v31, %v1566_v30  ;;  %v2082_v30 = vld [vmem:[#allocation3 + $0x4] sm:$0x1] }
0x1590   :  { %v1569_v34 = vsub.f32 2.0, %v1568_v33 }
0x1592   :  { %v1570_v36 = vmul.f32 %v5197_v31, %v1569_v34 }
0x1594   :  { %v1571_v38 = vmul.f32 %v5195_v28, %v1570_v36 }
0x1596   :  { %1572 = vst [vmem:[#allocation6 + $0x3] sm:$0x1] %v1571_v38  ;;  %4391 = vmatmul.mubr.f32.vlgmr.msra.gmra.mrb[8].mxu1 %v1571_v38 }
0x1597   :  { %4965 = vmatpush3.bf16.msra.mxu1 %v5449_v37  ;;  %4469 = vmatprep.mubr.msk.f32.mxu1 %vm5320_vm0, %v5321_v6 }
0x1598   :  { %4966 = vmatprep.subr.bf16.mxu1 %v5319_v3 }
0x159b   :  { %4968 = vmatpush3.bf16.msra.mxu1 %v5460_v40 }
0x159c   :  { %4969 = vmatprep.subr.bf16.mxu1 %v5319_v3 }
0x159f   :  { %4971 = vmatpush3.bf16.msra.mxu1 %v5472_v43  ;;  %v1659_v43 = vld [vmem:[#allocation3 + $0x3] sm:$0x1] }
0x15a0   :  { %4972 = vmatprep.subr.bf16.mxu1 %v5319_v3 }
0x15a3   :  { %4974 = vmatpush3.bf16.msra.mxu1 %v5484_v51 }
0x15a4   :  { %4975 = vmatprep.subr.bf16.mxu1 %v5319_v3 }
0x15a7   :  { %4977 = vmatpush3.bf16.msra.mxu1 %v5494_v54 }
0x15a8   :  { %4978 = vmatprep.subr.bf16.mxu1 %v5319_v3 }
0x15ab   :  { %4980 = vmatpush3.bf16.msra.mxu1 %v5504_v57 }
0x15ac   :  { %4981 = vmatprep.subr.bf16.mxu1 %v5319_v3 }
0x15af   :  { %4983 = vmatpush3.bf16.msra.mxu1 %v5514_v60 }
0x15b0   :  { %4984 = vmatprep.subr.bf16.mxu1 %v5319_v3 }
0x15b3   :  { %4986 = vmatpush3.bf16.msra.mxu1 %v5524_v63 }
0x15b4   :  { %5011 = vmatprep.subr.bf16.mxu1 %v5319_v3 }
0x1669   :  { %v1655_v37 = vpop.f32.mrb[8].mxu1 }
0x166a   :  { %v4392_v40 = vpop.f32.mrb[9].mxu1  ;;  %4402 = vmatmul.mubr.msk.f32.vlgmr.msra.gmra.mrb[28].mxu0 %vm32_vm1, %v1655_v37 }
0x166b   :  { %4947 = vmatpush3.bf16.msra.mxu0 %v5574_v27  ;;  %4412 = vmatprep.mubr.msk.f32.mxu0 %vm5320_vm0, %v5321_v6 }
0x166c   :  { %4948 = vmatprep.subr.bf16.mxu0 %v5319_v3 }
0x166f   :  { %4950 = vmatpush3.bf16.msra.mxu0 %v5584_v32 }
0x1670   :  { %4951 = vmatprep.subr.bf16.mxu0 %v5319_v3 }
0x1672   :  { %4413 = vmatmul.mubr.msk.f32.vlgmr.msra.gmra.mrb[30].mxu0 %vm32_vm1, %v1482_v16 }
0x1673   :  { %4953 = vmatpush3.bf16.msra.mxu0 %v5596_v35  ;;  %4423 = vmatprep.mubr.msk.f32.mxu0 %vm5320_vm0, %v5321_v6 }
0x1674   :  { %4954 = vmatprep.subr.bf16.mxu0 %v5319_v3 }
0x1677   :  { %4956 = vmatpush3.bf16.msra.mxu0 %v5611_v39 }
0x1678   :  { %4957 = vmatprep.subr.bf16.mxu0 %v5319_v3 }
0x173d   :  { %v1729_v51 = vpop.f32.mrb[28].mxu0 }
0x173e   :  { %v1730_v54 = vadd.f32 %v1729_v51, %v1659_v43  ;;  %v4403_v57 = vpop.f32.mrb[29].mxu0 }
0x1740   :  { %v1733_v60 = vmax.f32 %v1730_v54, 0.0 }
0x1742   :  { %4424 = vmatmul.mubr.msk.f32.vlgmr.msra.gmra.mrb[32].mxu0 %vm32_vm1, %v1733_v60 }
0x1743   :  { %4959 = vmatpush3.bf16.msra.mxu0 %v5391_v11  ;;  %4434 = vmatprep.mubr.msk.f32.mxu0 %vm5320_vm0, %v5321_v6 }
0x1744   :  { %4960 = vmatprep.subr.bf16.mxu0 %v5319_v3 }
0x1745   :  { %v1800_v63 = vpop.f32.mrb[30].mxu0 }
0x1746   :  { %v4414_v41 = vpop.f32.mrb[31].mxu0 }
0x1747   :  { %4962 = vmatpush3.bf16.msra.mxu0 %v5402_v14 }
0x1748   :  { %4987 = vmatprep.subr.bf16.mxu0 %v5319_v3 }
0x1815   :  { %v1873_v42 = vpop.f32.mrb[32].mxu0 }
0x1816   :  { %v1874_v44 = vadd.f32 %v1873_v42, %v1800_v63  ;;  %v4425_v45 = vpop.f32.mrb[33].mxu0 }
0x1818   :  { %v1877_v46 = vadd.f32 %v1874_v44, %v5623_v49 }
0x181a   :  { %1885 = vrot.lane.b32.xlu0 %v1877_v46, %s5322_s29  ;;  %v3755_v47 = vmul.f32 -1.442695, %v1877_v46 }
0x181c   :  { %5198 = vpow2.f32 %v3755_v47 }
0x1826   :  { %v5199_v48 = vpop.eup %5198 }
0x1827   :  { %v1881_v50 = vadd.f32 1.0, %v5199_v48 }
0x1829   :  { %5200 = vrcp.f32 %v1881_v50 }
0x1833   :  { %v5201_v52 = vpop.eup %5200 }
0x1834   :  { %v1895_v61 = vsub.f32 1.0, %v5201_v52  ;;  %v1901_v0 = vmul.f32 %v5201_v52, %v5749_v18 }
0x188c   :  { %v1886_v53 = vpop.permute.xlu0 %1885 }
0x188d   :  { %v1888_v55 = vmul.f32 %v5201_v52, %v1886_v53 }
0x188f   :  { %1890 = vrot.lane.b32.xlu1 %v1888_v55, %s5323_s30 }
0x1901   :  { %v1891_v56 = vpop.permute.xlu1 %1890 }
0x1902   :  { %v1893_v58 = vadd.f32 %v1891_v56, %v1877_v46 }
0x1904   :  { %5202 = vtanh.f32 %v1893_v58  ;;  %v2331_v58 = vld [vmem:[#allocation2 + $0x5] sm:$0x1] }
0x190e   :  { %v5203_v59 = vpop.eup %5202 }
0x190f   :  { %1897 = vrot.lane.b32.xlu0 %v5203_v59, %s5324_s7 }
0x1981   :  { %v1898_v62 = vpop.permute.xlu0 %1897 }
0x1982   :  { %v1900_v19 = vmul.f32 %v1898_v62, %v1895_v61 }
0x1984   :  { %v5807_v1 = vadd.f32 %v1901_v0, %v1900_v19  ;;  %v2419_v19 = vld [vmem:[%s6143_s2] sm:$0xff] }
0x1986   :  { %1904 = vrot.lane.b32.xlu1 %v5807_v1, %s5324_s7 }
0x19f8   :  { %v1905_v2 = vpop.permute.xlu1 %1904 }
0x19f9   :  { %1907 = vst.msk [vmem:[#allocation8 + $0x3] sm:$0x1] %vm637_vm3, %v1905_v2  ;;  %4435 = vmatmul.mubr.msk.f32.vlgmr.msra.gmra.mrb[34].mxu0 %vm32_vm1, %v1905_v2 }
0x19fa   :  { %4989 = vmatpush3.bf16.msra.mxu0 %v5537_v4  ;;  %4480 = vmatprep.mubr.msk.f32.mxu0 %vm5320_vm0, %v5321_v6 }
0x19fb   :  { %4990 = vmatprep.subr.bf16.mxu0 %v5319_v3 }
0x19fe   :  { %4992 = vmatpush3.bf16.msra.mxu0 %v5543_v7 }
0x19ff   :  { %4993 = vmatprep.subr.bf16.mxu0 %v5319_v3 }
0x1acc   :  { %v1977_v8 = vpop.f32.mrb[34].mxu0 }
0x1acd   :  { %v1978_v9 = vadd.f32 %v1977_v8, %v1908_v5  ;;  %v4436_v10 = vpop.f32.mrb[35].mxu0  ;;  %v2422_v8 = vld [vmem:[%s6143_s2 + $0x18] sm:$0xff] }
0x1ace   :  { %v2423_v10 = vld [vmem:[%s6143_s2 + $0x20] sm:$0xff] }
0x1acf   :  { %v1981_v12 = vsel %vm277_vm2, %v1978_v9, -inf }
0x1ad0   :  { %1982 = vmax.xlane.f32.xlu0 %v1981_v12  ;;  %v2424_v12 = vld [vmem:[%s6143_s2 + $0x28] sm:$0xff] }
0x1b5d   :  { %v1983_v13 = vpop.xlane.xlu0 %1982 }
0x1b5e   :  { %v1984_v18 = vsub.f32 %v1978_v9, %v1983_v13  ;;  %v5891_v13 = vpack.c.bf16 %v2424_v12, %v2423_v10 }
0x1b60   :  { %v1985_v16 = vmul.f32 1.442695, %v1984_v18 }
0x1b62   :  { %5204 = vpow2.f32 %v1985_v16 }
0x1b6c   :  { %v5205_v15 = vpop.eup %5204 }
0x1b6d   :  { %v1987_v20 = vsel %vm277_vm2, %v5205_v15, 0.0 }
0x1b6e   :  { %1988 = vadd.xlane.f32.xlu1 %v1987_v20 }
0x1bfb   :  { %v1989_v21 = vpop.xlane.xlu1 %1988 }
0x1bfc   :  { %5206 = vrcp.f32 %v1989_v21 }
0x1c06   :  { %v5207_v22 = vpop.eup %5206 }
0x1c07   :  { %v1991_v23 = vmul.f32 %v5207_v22, %v1989_v21 }
0x1c09   :  { %v1992_v24 = vsub.f32 2.0, %v1991_v23  ;;  %v2426_v23 = vld [vmem:[%s6143_s2 + $0x38] sm:$0xff] }
0x1c0b   :  { %v1993_v25 = vmul.f32 %v5207_v22, %v1992_v24  ;;  %v2425_v22 = vld [vmem:[%s6143_s2 + $0x30] sm:$0xff] }
0x1c0c   :  { %v5903_v24 = vpack.c.bf16 %v2426_v23, %v2425_v22 }
0x1c0d   :  { %v1994_v26 = vmul.f32 %v5205_v15, %v1993_v25  ;;  %v2427_v25 = vld [vmem:[%s6143_s2 + $0x40] sm:$0xff] }
0x1c0f   :  { %1995 = vst [vmem:[#allocation6 + $0x4] sm:$0x1] %v1994_v26  ;;  %4470 = vmatmul.mubr.f32.vlgmr.msra.gmra.mrb[10].mxu1 %v1994_v26  ;;  %v2428_v26 = vld [vmem:[%s6143_s2 + $0x48] sm:$0xff] }
0x1c10   :  { %4548 = vmatprep.mubr.msk.f32.mxu1 %vm5320_vm0, %v5321_v6 }
0x1ce2   :  { %v2078_v28 = vpop.f32.mrb[10].mxu1 }
0x1ce3   :  { %v4471_v29 = vpop.f32.mrb[11].mxu1  ;;  %4481 = vmatmul.mubr.msk.f32.vlgmr.msra.gmra.mrb[36].mxu0 %vm32_vm1, %v2078_v28  ;;  %v5913_v28 = vpack.c.bf16 %v2428_v26, %v2427_v25 }
0x1ce4   :  { %4995 = vmatpush3.bf16.msra.mxu0 %v5574_v27  ;;  %4491 = vmatprep.mubr.msk.f32.mxu0 %vm5320_vm0, %v5321_v6  ;;  %v2429_v29 = vld [vmem:[%s6143_s2 + $0x50] sm:$0xff] }
0x1ce5   :  { %4996 = vmatprep.subr.bf16.mxu0 %v5319_v3 }
0x1ce8   :  { %4998 = vmatpush3.bf16.msra.mxu0 %v5584_v32 }
0x1ce9   :  { %4999 = vmatprep.subr.bf16.mxu0 %v5319_v3 }
0x1ceb   :  { %4492 = vmatmul.mubr.msk.f32.vlgmr.msra.gmra.mrb[38].mxu0 %vm32_vm1, %v1905_v2  ;;  %v2421_v2 = vld [vmem:[%s6143_s2 + $0x10] sm:$0xff] }
0x1cec   :  { %5001 = vmatpush3.bf16.msra.mxu0 %v5596_v35  ;;  %4502 = vmatprep.mubr.msk.f32.mxu0 %vm5320_vm0, %v5321_v6  ;;  %v5881_v9 = vpack.c.bf16 %v2422_v8, %v2421_v2 }
0x1ced   :  { %5002 = vmatprep.subr.bf16.mxu0 %v5319_v3 }
0x1cf0   :  { %5004 = vmatpush3.bf16.msra.mxu0 %v5611_v39 }
0x1cf1   :  { %5005 = vmatprep.subr.bf16.mxu0 %v5319_v3 }
0x1db6   :  { %v2152_v31 = vpop.f32.mrb[36].mxu0 }
0x1db7   :  { %v2153_v33 = vadd.f32 %v2152_v31, %v2082_v30  ;;  %v4482_v34 = vpop.f32.mrb[37].mxu0  ;;  %v2430_v30 = vld [vmem:[%s6143_s2 + $0x58] sm:$0xff] }
0x1db8   :  { %v5923_v31 = vpack.c.bf16 %v2430_v30, %v2429_v29  ;;  %v2432_v34 = vld [vmem:[%s6143_s2 + $0x68] sm:$0xff] }
0x1db9   :  { %v2156_v36 = vmax.f32 %v2153_v33, 0.0  ;;  %v2431_v33 = vld [vmem:[%s6143_s2 + $0x60] sm:$0xff] }
0x1dbb   :  { %4503 = vmatmul.mubr.msk.f32.vlgmr.msra.gmra.mrb[40].mxu0 %vm32_vm1, %v2156_v36  ;;  %v5933_v36 = vpack.c.bf16 %v2432_v34, %v2431_v33 }
0x1dbc   :  { %5007 = vmatpush3.bf16.msra.mxu0 %v5391_v11  ;;  %4513 = vmatprep.mubr.msk.f32.mxu0 %vm5320_vm0, %v5321_v6 }
0x1dbd   :  { %5008 = vmatprep.subr.bf16.mxu0 %v5319_v3 }
0x1dbe   :  { %v2223_v38 = vpop.f32.mrb[38].mxu0 }
0x1dbf   :  { %v4493_v37 = vpop.f32.mrb[39].mxu0 }
0x1dc0   :  { %5010 = vmatpush3.bf16.msra.mxu0 %v5402_v14  ;;  %v2434_v37 = vld [vmem:[%s6143_s2 + $0x78] sm:$0xff] }
0x1dc1   :  { %5035 = vmatprep.subr.bf16.mxu0 %v5319_v3 }
0x1e8e   :  { %v2296_v40 = vpop.f32.mrb[40].mxu0 }
0x1e8f   :  { %v2297_v43 = vadd.f32 %v2296_v40, %v2223_v38  ;;  %v4504_v51 = vpop.f32.mrb[41].mxu0  ;;  %v2433_v38 = vld [vmem:[%s6143_s2 + $0x70] sm:$0xff] }
0x1e90   :  { %v5943_v40 = vpack.c.bf16 %v2434_v37, %v2433_v38 }
0x1e91   :  { %v2300_v54 = vadd.f32 %v2297_v43, %v5623_v49 }
0x1e93   :  { %2308 = vrot.lane.b32.xlu0 %v2300_v54, %s5322_s29  ;;  %v3760_v57 = vmul.f32 -1.442695, %v2300_v54 }
0x1e95   :  { %5208 = vpow2.f32 %v3760_v57 }
0x1e9f   :  { %v5209_v60 = vpop.eup %5208 }
0x1ea0   :  { %v2304_v63 = vadd.f32 1.0, %v5209_v60 }
0x1ea2   :  { %5210 = vrcp.f32 %v2304_v63 }
0x1eac   :  { %v5211_v41 = vpop.eup %5210 }
0x1ead   :  { %v2318_v48 = vsub.f32 1.0, %v5211_v41  ;;  %v2324_v52 = vmul.f32 %v5211_v41, %v5807_v1  ;;  %v2420_v1 = vld [vmem:[%s6143_s2 + $0x8] sm:$0xff] }
0x1eae   :  { %v5875_v5 = vpack.c.bf16 %v2420_v1, %v2419_v19 }
0x1eb0   :  { %5013 = vmatpush3.bf16.msra.mxu1 %v5875_v5 }
0x1eb1   :  { %5014 = vmatprep.subr.bf16.mxu1 %v5319_v3 }
0x1eb4   :  { %5016 = vmatpush3.bf16.msra.mxu1 %v5881_v9 }
0x1eb5   :  { %5017 = vmatprep.subr.bf16.mxu1 %v5319_v3 }
0x1eb8   :  { %5019 = vmatpush3.bf16.msra.mxu1 %v5891_v13 }
0x1eb9   :  { %5020 = vmatprep.subr.bf16.mxu1 %v5319_v3 }
0x1ebc   :  { %5022 = vmatpush3.bf16.msra.mxu1 %v5903_v24 }
0x1ebd   :  { %5023 = vmatprep.subr.bf16.mxu1 %v5319_v3 }
0x1ec0   :  { %5025 = vmatpush3.bf16.msra.mxu1 %v5913_v28 }
0x1ec1   :  { %5026 = vmatprep.subr.bf16.mxu1 %v5319_v3 }
0x1ec4   :  { %5028 = vmatpush3.bf16.msra.mxu1 %v5923_v31 }
0x1ec5   :  { %5029 = vmatprep.subr.bf16.mxu1 %v5319_v3 }
0x1ec8   :  { %5031 = vmatpush3.bf16.msra.mxu1 %v5933_v36 }
0x1ec9   :  { %5032 = vmatprep.subr.bf16.mxu1 %v5319_v3 }
0x1ecc   :  { %5034 = vmatpush3.bf16.msra.mxu1 %v5943_v40 }
0x1ecd   :  { %5059 = vmatprep.subr.bf16.mxu1 %v5319_v3 }
0x1f05   :  { %v2309_v42 = vpop.permute.xlu0 %2308 }
0x1f06   :  { %v2311_v44 = vmul.f32 %v5211_v41, %v2309_v42 }
0x1f08   :  { %2313 = vrot.lane.b32.xlu1 %v2311_v44, %s5323_s30  ;;  %v2505_v44 = vld [vmem:[#allocation3 + $0x5] sm:$0x1] }
0x1f7a   :  { %v2314_v45 = vpop.permute.xlu1 %2313 }
0x1f7b   :  { %v2316_v46 = vadd.f32 %v2314_v45, %v2300_v54 }
0x1f7d   :  { %5212 = vtanh.f32 %v2316_v46 }
0x1f87   :  { %v5213_v47 = vpop.eup %5212 }
0x1f88   :  { %2320 = vrot.lane.b32.xlu0 %v5213_v47, %s5324_s7 }
0x1ffa   :  { %v2321_v50 = vpop.permute.xlu0 %2320 }
0x1ffb   :  { %v2323_v53 = vmul.f32 %v2321_v50, %v2318_v48 }
0x1ffd   :  { %v5849_v55 = vadd.f32 %v2324_v52, %v2323_v53 }
0x1fff   :  { %2327 = vrot.lane.b32.xlu1 %v5849_v55, %s5324_s7 }
0x2071   :  { %v5853_v56 = vpop.permute.xlu1 %2327 }
0x2072   :  { %2330 = vst.msk [vmem:[#allocation8 + $0x4] sm:$0x1] %vm637_vm3, %v5853_v56  ;;  %4514 = vmatmul.mubr.msk.f32.vlgmr.msra.gmra.mrb[42].mxu0 %vm32_vm1, %v5853_v56 }
0x2073   :  { %5037 = vmatpush3.bf16.msra.mxu0 %v5537_v4  ;;  %4559 = vmatprep.mubr.msk.f32.mxu0 %vm5320_vm0, %v5321_v6 }
0x2074   :  { %5038 = vmatprep.subr.bf16.mxu0 %v5319_v3 }
0x2077   :  { %5040 = vmatpush3.bf16.msra.mxu0 %v5543_v7 }
0x2078   :  { %5041 = vmatprep.subr.bf16.mxu0 %v5319_v3 }
0x2145   :  { %v2400_v59 = vpop.f32.mrb[42].mxu0 }
0x2146   :  { %v2401_v61 = vadd.f32 %v2400_v59, %v2331_v58  ;;  %v4515_v62 = vpop.f32.mrb[43].mxu0 }
0x2148   :  { %v2404_v0 = vsel %vm277_vm2, %v2401_v61, -inf }
0x2149   :  { %2405 = vmax.xlane.f32.xlu0 %v2404_v0 }
0x21d6   :  { %v2406_v18 = vpop.xlane.xlu0 %2405 }
0x21d7   :  { %v2407_v16 = vsub.f32 %v2401_v61, %v2406_v18 }
0x21d9   :  { %v2408_v15 = vmul.f32 1.442695, %v2407_v16 }
0x21db   :  { %5214 = vpow2.f32 %v2408_v15 }
0x21e5   :  { %v5215_v20 = vpop.eup %5214 }
0x21e6   :  { %v2410_v21 = vsel %vm277_vm2, %v5215_v20, 0.0 }
0x21e7   :  { %2411 = vadd.xlane.f32.xlu1 %v2410_v21 }
0x2274   :  { %v2412_v43 = vpop.xlane.xlu1 %2411 }
0x2275   :  { %5216 = vrcp.f32 %v2412_v43 }
0x227f   :  { %v5217_v51 = vpop.eup %5216 }
0x2280   :  { %v2414_v54 = vmul.f32 %v5217_v51, %v2412_v43 }
0x2282   :  { %v2415_v57 = vsub.f32 2.0, %v2414_v54 }
0x2284   :  { %v2416_v60 = vmul.f32 %v5217_v51, %v2415_v57 }
0x2286   :  { %v2417_v63 = vmul.f32 %v5215_v20, %v2416_v60 }
0x2288   :  { %2418 = vst [vmem:[#allocation6 + $0x5] sm:$0x1] %v2417_v63  ;;  %4549 = vmatmul.mubr.f32.vlgmr.msra.gmra.mrb[12].mxu1 %v2417_v63 }
0x2289   :  { %5061 = vmatpush3.bf16.msra.mxu1 %v5875_v5  ;;  %4627 = vmatprep.mubr.msk.f32.mxu1 %vm5320_vm0, %v5321_v6 }
0x228a   :  { %5062 = vmatprep.subr.bf16.mxu1 %v5319_v3 }
0x228d   :  { %5064 = vmatpush3.bf16.msra.mxu1 %v5881_v9 }
0x228e   :  { %5065 = vmatprep.subr.bf16.mxu1 %v5319_v3 }
0x2291   :  { %5067 = vmatpush3.bf16.msra.mxu1 %v5891_v13 }
0x2292   :  { %5068 = vmatprep.subr.bf16.mxu1 %v5319_v3 }
0x2295   :  { %5070 = vmatpush3.bf16.msra.mxu1 %v5903_v24 }
0x2296   :  { %5071 = vmatprep.subr.bf16.mxu1 %v5319_v3 }
0x2299   :  { %5073 = vmatpush3.bf16.msra.mxu1 %v5913_v28 }
0x229a   :  { %5074 = vmatprep.subr.bf16.mxu1 %v5319_v3 }
0x229d   :  { %5076 = vmatpush3.bf16.msra.mxu1 %v5923_v31 }
0x229e   :  { %5077 = vmatprep.subr.bf16.mxu1 %v5319_v3 }
0x22a1   :  { %5079 = vmatpush3.bf16.msra.mxu1 %v5933_v36 }
0x22a2   :  { %5080 = vmatprep.subr.bf16.mxu1 %v5319_v3 }
0x22a5   :  { %5082 = vmatpush3.bf16.msra.mxu1 %v5943_v40 }
0x22a6   :  { %5107 = vmatprep.subr.bf16.mxu1 %v5319_v3 }
0x235b   :  { %v2501_v41 = vpop.f32.mrb[12].mxu1 }
0x235c   :  { %v4550_v42 = vpop.f32.mrb[13].mxu1  ;;  %4560 = vmatmul.mubr.msk.f32.vlgmr.msra.gmra.mrb[44].mxu0 %vm32_vm1, %v2501_v41 }
0x235d   :  { %5043 = vmatpush3.bf16.msra.mxu0 %v5574_v27  ;;  %4570 = vmatprep.mubr.msk.f32.mxu0 %vm5320_vm0, %v5321_v6 }
0x235e   :  { %5044 = vmatprep.subr.bf16.mxu0 %v5319_v3 }
0x2361   :  { %5046 = vmatpush3.bf16.msra.mxu0 %v5584_v32 }
0x2362   :  { %5047 = vmatprep.subr.bf16.mxu0 %v5319_v3 }
0x2364   :  { %4571 = vmatmul.mubr.msk.f32.vlgmr.msra.gmra.mrb[46].mxu0 %vm32_vm1, %v5853_v56 }
0x2365   :  { %5049 = vmatpush3.bf16.msra.mxu0 %v5596_v35  ;;  %4581 = vmatprep.mubr.msk.f32.mxu0 %vm5320_vm0, %v5321_v6 }
0x2366   :  { %5050 = vmatprep.subr.bf16.mxu0 %v5319_v3 }
0x2369   :  { %5052 = vmatpush3.bf16.msra.mxu0 %v5611_v39 }
0x236a   :  { %5053 = vmatprep.subr.bf16.mxu0 %v5319_v3 }
0x242f   :  { %v2575_v45 = vpop.f32.mrb[44].mxu0 }
0x2430   :  { %v2576_v46 = vadd.f32 %v2575_v45, %v2505_v44  ;;  %v4561_v47 = vpop.f32.mrb[45].mxu0 }
0x2432   :  { %v2579_v48 = vmax.f32 %v2576_v46, 0.0 }
0x2434   :  { %4582 = vmatmul.mubr.msk.f32.vlgmr.msra.gmra.mrb[48].mxu0 %vm32_vm1, %v2579_v48 }
0x2435   :  { %5055 = vmatpush3.bf16.msra.mxu0 %v5391_v11  ;;  %4592 = vmatprep.mubr.msk.f32.mxu0 %vm5320_vm0, %v5321_v6 }
0x2436   :  { %5056 = vmatprep.subr.bf16.mxu0 %v5319_v3 }
0x2437   :  { %v2646_v50 = vpop.f32.mrb[46].mxu0 }
0x2438   :  { %v4572_v52 = vpop.f32.mrb[47].mxu0 }
0x2439   :  { %5058 = vmatpush3.bf16.msra.mxu0 %v5402_v14 }
0x243a   :  { %5083 = vmatprep.subr.bf16.mxu0 %v5319_v3 }
0x2507   :  { %v2719_v53 = vpop.f32.mrb[48].mxu0 }
0x2508   :  { %v2720_v56 = vadd.f32 %v2719_v53, %v2646_v50  ;;  %v4583_v58 = vpop.f32.mrb[49].mxu0 }
0x250a   :  { %v2723_v59 = vadd.f32 %v2720_v56, %v5623_v49 }
0x250c   :  { %2731 = vrot.lane.b32.xlu0 %v2723_v59, %s5322_s29  ;;  %v3765_v61 = vmul.f32 -1.442695, %v2723_v59 }
0x250e   :  { %5218 = vpow2.f32 %v3765_v61 }
0x2518   :  { %v5219_v62 = vpop.eup %5218 }
0x2519   :  { %v2727_v0 = vadd.f32 1.0, %v5219_v62 }
0x251b   :  { %5220 = vrcp.f32 %v2727_v0 }
0x2525   :  { %v5221_v19 = vpop.eup %5220 }
0x2526   :  { %v2741_v18 = vsub.f32 1.0, %v5221_v19  ;;  %v2747_v15 = vmul.f32 %v5221_v19, %v5849_v55  ;;  %v2754_v55 = vld [vmem:[#allocation2 + $0x6] sm:$0x1] }
0x257e   :  { %v2732_v1 = vpop.permute.xlu0 %2731 }
0x257f   :  { %v2734_v2 = vmul.f32 %v5221_v19, %v2732_v1 }
0x2581   :  { %2736 = vrot.lane.b32.xlu1 %v2734_v2, %s5323_s30  ;;  %v3177_v2 = vld [vmem:[#allocation2 + $0x7] sm:$0x1] }
0x25f3   :  { %v2737_v8 = vpop.permute.xlu1 %2736 }
0x25f4   :  { %v2739_v10 = vadd.f32 %v2737_v8, %v2723_v59 }
0x25f6   :  { %5222 = vtanh.f32 %v2739_v10 }
0x2600   :  { %v5223_v12 = vpop.eup %5222 }
0x2601   :  { %2743 = vrot.lane.b32.xlu0 %v5223_v12, %s5324_s7 }
0x2673   :  { %v2744_v16 = vpop.permute.xlu0 %2743 }
0x2674   :  { %v2746_v20 = vmul.f32 %v2744_v16, %v2741_v18 }
0x2676   :  { %v5992_v21 = vadd.f32 %v2747_v15, %v2746_v20 }
0x2678   :  { %2750 = vrot.lane.b32.xlu1 %v5992_v21, %s5324_s7 }
0x26ea   :  { %v2751_v22 = vpop.permute.xlu1 %2750 }
0x26eb   :  { %2753 = vst.msk [vmem:[#allocation8 + $0x5] sm:$0x1] %vm637_vm3, %v2751_v22  ;;  %4593 = vmatmul.mubr.msk.f32.vlgmr.msra.gmra.mrb[50].mxu0 %vm32_vm1, %v2751_v22 }
0x26ec   :  { %5085 = vmatpush3.bf16.msra.mxu0 %v5537_v4  ;;  %4638 = vmatprep.mubr.msk.f32.mxu0 %vm5320_vm0, %v5321_v6 }
0x26ed   :  { %5086 = vmatprep.subr.bf16.mxu0 %v5319_v3 }
0x26f0   :  { %5088 = vmatpush3.bf16.msra.mxu0 %v5543_v7 }
0x26f1   :  { %5089 = vmatprep.subr.bf16.mxu0 %v5319_v3 }
0x27be   :  { %v2823_v23 = vpop.f32.mrb[50].mxu0 }
0x27bf   :  { %v2824_v25 = vadd.f32 %v2823_v23, %v2754_v55  ;;  %v4594_v26 = vpop.f32.mrb[51].mxu0 }
0x27c1   :  { %v2827_v29 = vsel %vm277_vm2, %v2824_v25, -inf }
0x27c2   :  { %2828 = vmax.xlane.f32.xlu0 %v2827_v29 }
0x284f   :  { %v2829_v30 = vpop.xlane.xlu0 %2828 }
0x2850   :  { %v2830_v33 = vsub.f32 %v2824_v25, %v2829_v30 }
0x2852   :  { %v2831_v34 = vmul.f32 1.442695, %v2830_v33 }
0x2854   :  { %5224 = vpow2.f32 %v2831_v34 }
0x285e   :  { %v5225_v38 = vpop.eup %5224 }
0x285f   :  { %v2833_v37 = vsel %vm277_vm2, %v5225_v38, 0.0 }
0x2860   :  { %2834 = vadd.xlane.f32.xlu1 %v2833_v37 }
0x28ed   :  { %v2835_v43 = vpop.xlane.xlu1 %2834 }
0x28ee   :  { %5226 = vrcp.f32 %v2835_v43 }
0x28f8   :  { %v5227_v51 = vpop.eup %5226 }
0x28f9   :  { %v2837_v54 = vmul.f32 %v5227_v51, %v2835_v43 }
0x28fb   :  { %v2838_v57 = vsub.f32 2.0, %v2837_v54 }
0x28fd   :  { %v2839_v60 = vmul.f32 %v5227_v51, %v2838_v57 }
0x28ff   :  { %v2840_v63 = vmul.f32 %v5225_v38, %v2839_v60 }
0x2901   :  { %2841 = vst [vmem:[#allocation6 + $0x6] sm:$0x1] %v2840_v63  ;;  %4628 = vmatmul.mubr.f32.vlgmr.msra.gmra.mrb[14].mxu1 %v2840_v63 }
0x2902   :  { %5109 = vmatpush3.bf16.msra.mxu1 %v5875_v5  ;;  %4706 = vmatprep.mubr.msk.f32.mxu1 %vm5320_vm0, %v5321_v6 }
0x2903   :  { %5110 = vmatprep.subr.bf16.mxu1 %v5319_v3 }
0x2906   :  { %5112 = vmatpush3.bf16.msra.mxu1 %v5881_v9 }
0x2907   :  { %5113 = vmatprep.subr.bf16.mxu1 %v5319_v3 }
0x290a   :  { %5115 = vmatpush3.bf16.msra.mxu1 %v5891_v13  ;;  %v2928_v13 = vld [vmem:[#allocation3 + $0x6] sm:$0x1] }
0x290b   :  { %5116 = vmatprep.subr.bf16.mxu1 %v5319_v3 }
0x290e   :  { %5118 = vmatpush3.bf16.msra.mxu1 %v5903_v24 }
0x290f   :  { %5119 = vmatprep.subr.bf16.mxu1 %v5319_v3 }
0x2912   :  { %5121 = vmatpush3.bf16.msra.mxu1 %v5913_v28 }
0x2913   :  { %5122 = vmatprep.subr.bf16.mxu1 %v5319_v3 }
0x2916   :  { %5124 = vmatpush3.bf16.msra.mxu1 %v5923_v31 }
0x2917   :  { %5125 = vmatprep.subr.bf16.mxu1 %v5319_v3 }
0x291a   :  { %5127 = vmatpush3.bf16.msra.mxu1 %v5933_v36 }
0x291b   :  { %5128 = vmatprep.subr.bf16.mxu1 %v5319_v3 }
0x291e   :  { %5130 = vmatpush3.bf16.msra.mxu1 %v5943_v40 }
0x29d4   :  { %v2924_v5 = vpop.f32.mrb[14].mxu1 }
0x29d5   :  { %v4629_v9 = vpop.f32.mrb[15].mxu1  ;;  %4639 = vmatmul.mubr.msk.f32.vlgmr.msra.gmra.mrb[52].mxu0 %vm32_vm1, %v2924_v5 }
0x29d6   :  { %5091 = vmatpush3.bf16.msra.mxu0 %v5574_v27  ;;  %4649 = vmatprep.mubr.msk.f32.mxu0 %vm5320_vm0, %v5321_v6 }
0x29d7   :  { %5092 = vmatprep.subr.bf16.mxu0 %v5319_v3 }
0x29da   :  { %5094 = vmatpush3.bf16.msra.mxu0 %v5584_v32 }
0x29db   :  { %5095 = vmatprep.subr.bf16.mxu0 %v5319_v3 }
0x29dd   :  { %4650 = vmatmul.mubr.msk.f32.vlgmr.msra.gmra.mrb[54].mxu0 %vm32_vm1, %v2751_v22 }
0x29de   :  { %5097 = vmatpush3.bf16.msra.mxu0 %v5596_v35  ;;  %4660 = vmatprep.mubr.msk.f32.mxu0 %vm5320_vm0, %v5321_v6 }
0x29df   :  { %5098 = vmatprep.subr.bf16.mxu0 %v5319_v3 }
0x29e2   :  { %5100 = vmatpush3.bf16.msra.mxu0 %v5611_v39 }
0x29e3   :  { %5101 = vmatprep.subr.bf16.mxu0 %v5319_v3 }
0x2aa8   :  { %v2998_v24 = vpop.f32.mrb[52].mxu0 }
0x2aa9   :  { %v2999_v28 = vadd.f32 %v2998_v24, %v2928_v13  ;;  %v4640_v31 = vpop.f32.mrb[53].mxu0 }
0x2aaa   :  { %v3602_v31 = vld [vmem:[%s6144_s3 + $0xc8] sm:$0xff] }
0x2aab   :  { %v3002_v36 = vmax.f32 %v2999_v28, 0.0 }
0x2aad   :  { %4661 = vmatmul.mubr.msk.f32.vlgmr.msra.gmra.mrb[56].mxu0 %vm32_vm1, %v3002_v36  ;;  %v3603_v36 = vld [vmem:[%s6144_s3 + $0xd0] sm:$0xff] }
0x2aae   :  { %5103 = vmatpush3.bf16.msra.mxu0 %v5391_v11  ;;  %4671 = vmatprep.mubr.msk.f32.mxu0 %vm5320_vm0, %v5321_v6 }
0x2aaf   :  { %5104 = vmatprep.subr.bf16.mxu0 %v5319_v3 }
0x2ab0   :  { %v3069_v40 = vpop.f32.mrb[54].mxu0 }
0x2ab1   :  { %v4651_v41 = vpop.f32.mrb[55].mxu0 }
0x2ab2   :  { %5106 = vmatpush3.bf16.msra.mxu0 %v5402_v14  ;;  %v3604_v41 = vld [vmem:[%s6144_s3 + $0xd8] sm:$0xff] }
0x2ab3   :  { %5131 = vmatprep.subr.bf16.mxu0 %v5319_v3 }
0x2b80   :  { %v3142_v42 = vpop.f32.mrb[56].mxu0 }
0x2b81   :  { %v3143_v44 = vadd.f32 %v3142_v42, %v3069_v40  ;;  %v4662_v45 = vpop.f32.mrb[57].mxu0  ;;  %v5153_v42 = vpack.c.bf16 %v3604_v41, %v3603_v36 }
0x2b83   :  { %v3146_v46 = vadd.f32 %v3143_v44, %v5623_v49 }
0x2b85   :  { %3154 = vrot.lane.b32.xlu0 %v3146_v46, %s5322_s29  ;;  %v3770_v47 = vmul.f32 -1.442695, %v3146_v46 }
0x2b87   :  { %5228 = vpow2.f32 %v3770_v47 }
0x2b91   :  { %v5229_v11 = vpop.eup %5228 }
0x2b92   :  { %v3150_v48 = vadd.f32 1.0, %v5229_v11 }
0x2b94   :  { %5230 = vrcp.f32 %v3150_v48 }
0x2b9e   :  { %v5231_v50 = vpop.eup %5230 }
0x2b9f   :  { %v3164_v59 = vsub.f32 1.0, %v5231_v50  ;;  %v3170_v62 = vmul.f32 %v5231_v50, %v5992_v21 }
0x2bf7   :  { %v3155_v52 = vpop.permute.xlu0 %3154 }
0x2bf8   :  { %v3157_v53 = vmul.f32 %v5231_v50, %v3155_v52  ;;  %v3607_v52 = vsub.s32 3, %v5418_v17 }
0x2bfa   :  { %3159 = vrot.lane.b32.xlu1 %v3157_v53, %s5323_s30 }
0x2c6c   :  { %v3160_v14 = vpop.permute.xlu1 %3159 }
0x2c6d   :  { %v3162_v56 = vadd.f32 %v3160_v14, %v3146_v46 }
0x2c6f   :  { %5232 = vtanh.f32 %v3162_v56 }
0x2c79   :  { %v5233_v58 = vpop.eup %5232 }
0x2c7a   :  { %3166 = vrot.lane.b32.xlu0 %v5233_v58, %s5324_s7 }
0x2cec   :  { %v3167_v61 = vpop.permute.xlu0 %3166 }
0x2ced   :  { %v3169_v0 = vmul.f32 %v3167_v61, %v3164_v59 }
0x2cef   :  { %v6049_v19 = vadd.f32 %v3170_v62, %v3169_v0 }
0x2cf1   :  { %3173 = vrot.lane.b32.xlu1 %v6049_v19, %s5324_s7 }
0x2d63   :  { %v3174_v1 = vpop.permute.xlu1 %3173 }
0x2d64   :  { %3176 = vst.msk [vmem:[#allocation8 + $0x6] sm:$0x1] %vm637_vm3, %v3174_v1  ;;  %4672 = vmatmul.mubr.msk.f32.vlgmr.msra.gmra.mrb[58].mxu0 %vm32_vm1, %v3174_v1 }
0x2d65   :  { %5133 = vmatpush3.bf16.msra.mxu0 %v5537_v4  ;;  %4717 = vmatprep.mubr.msk.f32.mxu0 %vm5320_vm0, %v5321_v6 }
0x2d66   :  { %5134 = vmatprep.subr.bf16.mxu0 %v5319_v3 }
0x2d69   :  { %5136 = vmatpush3.bf16.msra.mxu0 %v5543_v7 }
0x2d6a   :  { %5137 = vmatprep.subr.bf16.mxu0 %v5319_v3 }
0x2e37   :  { %v3246_v8 = vpop.f32.mrb[58].mxu0 }
0x2e38   :  { %v3247_v10 = vadd.f32 %v3246_v8, %v3177_v2  ;;  %v4673_v12 = vpop.f32.mrb[59].mxu0 }
0x2e3a   :  { %v3250_v18 = vsel %vm277_vm2, %v3247_v10, -inf }
0x2e3b   :  { %3251 = vmax.xlane.f32.xlu0 %v3250_v18 }
0x2ec8   :  { %v3252_v16 = vpop.xlane.xlu0 %3251 }
0x2ec9   :  { %v3253_v15 = vsub.f32 %v3247_v10, %v3252_v16 }
0x2ecb   :  { %v3254_v20 = vmul.f32 1.442695, %v3253_v15 }
0x2ecd   :  { %5234 = vpow2.f32 %v3254_v20 }
0x2ed7   :  { %v5235_v4 = vpop.eup %5234 }
0x2ed8   :  { %v3256_v21 = vsel %vm277_vm2, %v5235_v4, 0.0 }
0x2ed9   :  { %3257 = vadd.xlane.f32.xlu1 %v3256_v21 }
0x2f66   :  { %v3258_v22 = vpop.xlane.xlu1 %3257 }
0x2f67   :  { %5236 = vrcp.f32 %v3258_v22 }
0x2f71   :  { %v5237_v7 = vpop.eup %5236 }
0x2f72   :  { %v3260_v55 = vmul.f32 %v5237_v7, %v3258_v22 }
0x2f74   :  { %v3261_v23 = vsub.f32 2.0, %v3260_v55 }
0x2f76   :  { %v3262_v25 = vmul.f32 %v5237_v7, %v3261_v23 }
0x2f78   :  { %v3263_v26 = vmul.f32 %v5235_v4, %v3262_v25 }
0x2f7a   :  { %3264 = vst [vmem:[#allocation6 + $0x7] sm:$0x1] %v3263_v26  ;;  %4707 = vmatmul.mubr.f32.vlgmr.msra.gmra.mrb[16].mxu1 %v3263_v26 }
0x304d   :  { %v3347_v29 = vpop.f32.mrb[16].mxu1 }
0x304e   :  { %v4708_v30 = vpop.f32.mrb[17].mxu1  ;;  %4718 = vmatmul.mubr.msk.f32.vlgmr.msra.gmra.mrb[60].mxu0 %vm32_vm1, %v3347_v29 }
0x304f   :  { %5139 = vmatpush3.bf16.msra.mxu0 %v5574_v27  ;;  %4728 = vmatprep.mubr.msk.f32.mxu0 %vm5320_vm0, %v5321_v6  ;;  %v3351_v27 = vld [vmem:[#allocation3 + $0x7] sm:$0x1] }
0x3050   :  { %5140 = vmatprep.subr.bf16.mxu0 %v5319_v3 }
0x3053   :  { %5142 = vmatpush3.bf16.msra.mxu0 %v5584_v32 }
0x3054   :  { %5143 = vmatprep.subr.bf16.mxu0 %v5319_v3 }
0x3056   :  { %4729 = vmatmul.mubr.msk.f32.vlgmr.msra.gmra.mrb[62].mxu0 %vm32_vm1, %v3174_v1 }
0x3057   :  { %5145 = vmatpush3.bf16.msra.mxu0 %v5596_v35  ;;  %4739 = vmatprep.mubr.msk.f32.mxu0 %vm5320_vm0, %v5321_v6 }
0x3058   :  { %5146 = vmatprep.subr.bf16.mxu0 %v5319_v3 }
0x305b   :  { %5148 = vmatpush3.bf16.msra.mxu0 %v5611_v39 }
0x305c   :  { %5149 = vmatprep.subr.bf16.mxu0 %v5319_v3 }
0x3121   :  { %v3421_v33 = vpop.f32.mrb[60].mxu0 }
0x3122   :  { %v3422_v34 = vadd.f32 %v3421_v33, %v3351_v27  ;;  %v4719_v38 = vpop.f32.mrb[61].mxu0 }
0x3124   :  { %v3425_v32 = vmax.f32 %v3422_v34, 0.0 }
0x3126   :  { %4740 = vmatmul.mubr.msk.f32.vlgmr.msra.gmra.mrb[64].mxu0 %vm32_vm1, %v3425_v32 }
0x3127   :  { %4750 = vmatprep.mubr.msk.f32.mxu0 %vm5320_vm0, %v5321_v6 }
0x3129   :  { %v3492_v35 = vpop.f32.mrb[62].mxu0 }
0x312a   :  { %v4730_v37 = vpop.f32.mrb[63].mxu0 }
0x31f9   :  { %v3565_v43 = vpop.f32.mrb[64].mxu0 }
0x31fa   :  { %v3566_v51 = vadd.f32 %v3565_v43, %v3492_v35  ;;  %v4741_v54 = vpop.f32.mrb[65].mxu0 }
0x31fc   :  { %v3569_v57 = vadd.f32 %v3566_v51, %v5623_v49  ;;  %v3601_v49 = vld [vmem:[%s6144_s3 + $0xc0] sm:$0xff] }
0x31fd   :  { %v5150_v40 = vpack.c.bf16 %v3602_v31, %v3601_v49 }
0x31fe   :  { %3577 = vrot.lane.b32.xlu0 %v3569_v57, %s5322_s29  ;;  %v3775_v39 = vmul.f32 -1.442695, %v3569_v57 }
0x31ff   :  { %5151 = vmatpush3.bf16.msra.mxu0 %v5150_v40 }
0x3200   :  { %5238 = vpow2.f32 %v3775_v39  ;;  %5152 = vmatprep.subr.bf16.mxu0 %v5319_v3  ;;  %v5248_v3 = vld [vmem:[%s6144_s3 + $0xe0] sm:$0xff] }
0x3201   :  { %v3608_v53 = vrot.slane %v5248_v3, %v3607_v52 }
0x3203   :  { %5154 = vmatpush3.bf16.msra.mxu0 %v5153_v42 }
0x320a   :  { %v5239_v60 = vpop.eup %5238 }
0x320b   :  { %v3573_v63 = vadd.f32 1.0, %v5239_v60 }
0x320d   :  { %5240 = vrcp.f32 %v3573_v63 }
0x3217   :  { %v5241_v5 = vpop.eup %5240 }
0x3218   :  { %v3587_v44 = vsub.f32 1.0, %v5241_v5  ;;  %v3593_v46 = vmul.f32 %v5241_v5, %v6049_v19 }
0x3270   :  { %v3578_v9 = vpop.permute.xlu0 %3577 }
0x3271   :  { %v3580_v13 = vmul.f32 %v5241_v5, %v3578_v9 }
0x3273   :  { %3582 = vrot.lane.b32.xlu1 %v3580_v13, %s5323_s30 }
0x32e5   :  { %v3583_v6 = vpop.permute.xlu1 %3582 }
0x32e6   :  { %v3585_v24 = vadd.f32 %v3583_v6, %v3569_v57 }
0x32e8   :  { %5242 = vtanh.f32 %v3585_v24 }
0x32f2   :  { %v5243_v28 = vpop.eup %5242 }
0x32f3   :  { %3589 = vrot.lane.b32.xlu0 %v5243_v28, %s5324_s7 }
0x3365   :  { %v3590_v45 = vpop.permute.xlu0 %3589 }
0x3366   :  { %v3592_v47 = vmul.f32 %v3590_v45, %v3587_v44 }
0x3368   :  { %v3594_v11 = vadd.f32 %v3593_v46, %v3592_v47 }
0x336a   :  { %3596 = vrot.lane.b32.xlu1 %v3594_v11, %s5324_s7  ;;  %s5325_s7 = smov [#allocation6]  }
0x336b   :  { %s3709_s22 = sshll.u32 %s5325_s7, 4  ;;  %s3710_s22 = int_to_ptr.vmem [resolvable:$true] %s3709_s22 }
0x336c   :  { %s5249_s23 = scalar_lea.vmem %s3710_s22, 128  ;;  %p5254_p1 = scmp.lt.s32.totalorder %s3710_s22, %s3710_s22 }
0x336d   :  { %p5250_p0 = scmp.ne.s32.totalorder %s3710_s22, %s5249_s23  ;;  %p5255_p2 = scmp.lt.s32.totalorder %s5249_s23, %s5249_s23 }
0x336f   :  { %p5256_p3 = por %p5255_p2, %p5254_p1 }
0x3371   :  { %p5257_p4 = pnand %p5256_p3, %p5250_p0 }
0x33dc   :  { %v3597_v48 = vpop.permute.xlu1 %3596 }
0x33dd   :  { %3599 = vst.msk [vmem:[#allocation8 + $0x7] sm:$0x1] %vm637_vm3, %v3597_v48 }
0x33e4   :  { %v3600_v50 = vld [vmem:[#allocation8] sm:$0xff] }
0x33e5   :  { %4751 = vmatmul.mubr.msk.f32.vlgmr.msra.gmra.mrb[66].mxu0 %vm32_vm1, %v3600_v50 }
0x34b8   :  { %v3678_v14 = vpop.f32.mrb[66].mxu0 }
0x34b9   :  { %v3679_v56 = vadd.f32 %v3678_v14, %v3608_v53  ;;  %v4752_v58 = vpop.f32.mrb[67].mxu0 }
0x34bb   :  { %3682 = vmax.xlane.f32.xlu0 %v3679_v56 }
0x3548   :  { %v3683_v59 = vpop.xlane.xlu0 %3682 }
0x3549   :  { %v3684_v61 = vsub.f32 %v3679_v56, %v3683_v59 }
0x354b   :  { %v3685_v62 = vmul.f32 1.442695, %v3684_v61 }
0x354d   :  { %5244 = vpow2.f32 %v3685_v62 }
0x3557   :  { %v5245_v0 = vpop.eup %5244 }
0x3558   :  { %3687 = vadd.xlane.f32.xlu1 %v5245_v0 }
0x3559   :  { %5260 = shalt.err (!%p5257_p4)
}
0x355a   :  { %s5261_s25 = scalar_lea.hbm %s6146_s5, 128 }
0x355b   :  { %p5262_p5 = scmp.ne.s32.totalorder %s6146_s5, %s5261_s25  ;;  %p5265_p6 = scmp.lt.u32.totalorder %s5261_s25, %s6146_s5 }
0x355d   :  { %p5267_p7 = pnand %p5265_p6, %p5262_p5 }
0x355f   :  { %5270 = shalt.err (!%p5267_p7)
}
0x3560   :  { %3712 = dma.vmem_to_hbm [thread:$0]  %s3710_s22, 128, %s6146_s5, [#allocation7]  }
0x3561   :  { %s5326_s11 = smov [#allocation8]  }
0x3562   :  { %s3719_s12 = sshll.u32 %s5326_s11, 4  ;;  %s3720_s12 = int_to_ptr.vmem [resolvable:$true] %s3719_s12 }
0x3563   :  { %s5271_s13 = scalar_lea.vmem %s3720_s12, 128  ;;  %p5276_p9 = scmp.lt.s32.totalorder %s3720_s12, %s3720_s12 }
0x3564   :  { %p5272_p8 = scmp.ne.s32.totalorder %s3720_s12, %s5271_s13  ;;  %p5277_p10 = scmp.lt.s32.totalorder %s5271_s13, %s5271_s13 }
0x3566   :  { %p5278_p11 = por %p5277_p10, %p5276_p9 }
0x3568   :  { %p5279_p12 = pnand %p5278_p11, %p5272_p8 }
0x356a   :  { %5282 = shalt.err (!%p5279_p12)
}
0x356b   :  { %s5283_s15 = scalar_lea.hbm %s6147_s6, 128 }
0x356c   :  { %p5284_p13 = scmp.ne.s32.totalorder %s6147_s6, %s5283_s15  ;;  %p5287_p0 = scmp.lt.u32.totalorder %s5283_s15, %s6147_s6 }
0x356e   :  { %p5289_p1 = pnand %p5287_p0, %p5284_p13 }
0x3570   :  { %5292 = shalt.err (!%p5289_p1)
}
0x3571   :  { %3722 = dma.vmem_to_hbm [thread:$0]  %s3720_s12, 128, %s6147_s6, [#allocation7]  }
0x3572   :  { %s5327_s18 = smov [#allocation4]  }
0x3573   :  { %s3699_s30 = sshll.u32 %s5327_s18, 4  ;;  %s3700_s30 = int_to_ptr.vmem [resolvable:$true] %s3699_s30 }
0x3574   :  { %s5293_s19 = scalar_lea.vmem %s3700_s30, 128  ;;  %p5298_p3 = scmp.lt.s32.totalorder %s3700_s30, %s3700_s30 }
0x3575   :  { %p5294_p2 = scmp.ne.s32.totalorder %s3700_s30, %s5293_s19  ;;  %p5299_p4 = scmp.lt.s32.totalorder %s5293_s19, %s5293_s19 }
0x3577   :  { %p5300_p5 = por %p5299_p4, %p5298_p3 }
0x3579   :  { %p5301_p6 = pnand %p5300_p5, %p5294_p2 }
0x35e5   :  { %v3688_v17 = vpop.xlane.xlu1 %3687 }
0x35e6   :  { %5246 = vlog2.f32 %v3688_v17 }
0x35f0   :  { %v5247_v19 = vpop.eup %5246 }
0x35f1   :  { %v3690_v1 = vmul.f32 0.6931472, %v5247_v19 }
0x35f3   :  { %v3691_v2 = vsub.f32 %v3684_v61, %v3690_v1 }
0x35f5   :  { %3692 = vst [vmem:[#allocation4] sm:$0xff] %v3691_v2 }
0x35f6   :  { %5304 = shalt.err (!%p5301_p6)
}
0x35f7   :  { %s5305_s6 = scalar_lea.hbm %s6145_s4, 128 }
0x35f8   :  { %p5306_p7 = scmp.ne.s32.totalorder %s6145_s4, %s5305_s6  ;;  %p5309_p8 = scmp.lt.u32.totalorder %s5305_s6, %s6145_s4 }
0x35fa   :  { %p5311_p9 = pnand %p5309_p8, %p5306_p7 }
0x35fc   :  { %5314 = shalt.err (!%p5311_p9)
}
0x35fd   :  { %3702 = dma.vmem_to_hbm [thread:$0]  %s3700_s30, 128, %s6145_s4, [#allocation5]  }
0x35fe   :  { %5315 = dma.done.wait [#allocation5], 128  }
0x35ff   :  { %5316 = vsyncadd [#allocation5], 4294967168 }
0x3600   :  { %5317 = dma.done.wait [#allocation7], 256  }
0x3601   :  { %5318 = vsyncadd [#allocation7], 4294967040 }
0x3602   :  { %3732 = vsyncpa [#allocation5], 1 }
0x3603   :  { %3733 = vsyncpa [#allocation7], 1 }

</bundles_post_ra>
